<compile_context>
chip_gen: v7x
topology: tpu7x:2x2x1
jax: 0.10.0
libtpu: 0.0.40
codegen_flags: <defaults>
</compile_context>

<pallas_src>
import functools

import jax
import jax.numpy as jnp
from jax.experimental import pallas as pl
from jax.experimental.pallas import tpu as pltpu


EPS = 1e-5


def _round_up(a, b):
    return (a + b - 1) // b * b


def _pad_to(a, shape):
    return jnp.pad(a, [(0, s - d) for s, d in zip(shape, a.shape)])


@functools.lru_cache(maxsize=1)
def _single_buffer_ok():
    """One-time probe: is pipeline_mode=pl.Buffered(1) supported here?"""
    try:
        def k(x_ref, o_ref):
            o_ref[...] = x_ref[...] + 1.0

        f = pl.pallas_call(
            k,
            out_shape=jax.ShapeDtypeStruct((8, 128), jnp.float32),
            grid=(1,),
            in_specs=[pl.BlockSpec((8, 128), lambda i: (0, 0),
                                   pipeline_mode=pl.Buffered(1))],
            out_specs=pl.BlockSpec((8, 128), lambda i: (0, 0)),
        )
        jax.block_until_ready(f(jnp.zeros((8, 128), jnp.float32)))
        return True
    except Exception:
        return False


def _vmem_limit_bytes():
    """3/4 of this generation's VMEM (96 MiB on v5e/v6e, 48 MiB on v7x)."""
    try:
        cap = int(pltpu.get_tpu_info().vmem_capacity_bytes)
    except Exception:
        cap = 64 * 1024 * 1024
    return max(32 * 1024 * 1024, (cap * 3) // 4)


# --------------------------------------------------------------------------------------
# Fused kernel: attention + residual + LN1 + FFN (d_ff-chunked) + residual + LN2
#   x block: (BN*Lp, Cp) bf16 rows (BN batch elements, Lp padded seq, Cp padded channels)
# --------------------------------------------------------------------------------------
def _encoder_layer_kernel(x_ref, wqkv_ref, wo_ref, ln1_ref, w1_ref, b1_ref,
                          w2_ref, ln2_ref, o_ref, *,
                          bn, lp, l_real, c_real, dff_chunk, n_chunks, inv_c):
    rows = x_ref.shape[0]
    cp = x_ref.shape[-1]

    xb = x_ref[...]                                   # (rows, Cp) bf16
    xf = xb.astype(jnp.float32)                       # residual path in f32

    # lane mask over real channels (only materialized when the channel axis is padded)
    cmask = None
    if cp != c_real:
        cmask = jax.lax.broadcasted_iota(jnp.int32, (1, cp), 1) < c_real

    def layernorm(z, gamma, beta):
        # two-pass statistics; padded lanes masked out of the variance sum
        mu = jnp.sum(z, axis=-1, keepdims=True) * inv_c
        d = z - mu
        dm = d if cmask is None else jnp.where(cmask, d, 0.0)
        var = jnp.sum(dm * dm, axis=-1, keepdims=True) * inv_c
        return d * jax.lax.rsqrt(var + EPS) * gamma + beta

    # ---- fused QKV projection: one wide MXU matmul (1/sqrt(C) folded into Wq) ----
    qkv = jnp.dot(xb, wqkv_ref[...], preferred_element_type=jnp.float32)
    q3 = qkv[:, 0 * cp:1 * cp].reshape(bn, lp, cp).astype(jnp.bfloat16)
    k3 = qkv[:, 1 * cp:2 * cp].reshape(bn, lp, cp).astype(jnp.bfloat16)
    v3 = qkv[:, 2 * cp:3 * cp].reshape(bn, lp, cp).astype(jnp.bfloat16)

    # scores: contraction over the shared channel axis (no explicit transpose)
    s = jnp.einsum("bqd,bkd->bqk", q3, k3, preferred_element_type=jnp.float32)
    if lp != l_real:                                  # mask padded key positions
        kmask = jax.lax.broadcasted_iota(jnp.int32, (1, 1, lp), 2) < l_real
        s = jnp.where(kmask, s, -1e30)

    # numerically-stable softmax; reciprocal goes to the (otherwise idle) EUP
    s = s - jnp.max(s, axis=-1, keepdims=True)
    p = jnp.exp(s)
    p = p * pl.reciprocal(jnp.sum(p, axis=-1, keepdims=True), approx=True)

    a = jnp.einsum("bqk,bkd->bqd", p.astype(jnp.bfloat16), v3,
                   preferred_element_type=jnp.float32)
    attn_out = jnp.dot(a.reshape(rows, cp).astype(jnp.bfloat16), wo_ref[...],
                       preferred_element_type=jnp.float32)

    # residual + LayerNorm1 (dropout = identity in eval mode)
    xn = layernorm(xf + attn_out, ln1_ref[0], ln1_ref[1])

    # ---- position-wise FFN (conv1 k=1 -> relu -> conv2 k=1), chunked over d_ff ----
    xnb = xn.astype(jnp.bfloat16)
    y = jnp.zeros((rows, cp), jnp.float32)
    for ci in range(n_chunks):
        c0 = ci * dff_chunk
        h = jnp.dot(xnb, w1_ref[:, c0:c0 + dff_chunk],
                    preferred_element_type=jnp.float32)
        h = jnp.maximum(h + b1_ref[:, c0:c0 + dff_chunk], 0.0)     # relu
        y = y + jnp.dot(h.astype(jnp.bfloat16), w2_ref[c0:c0 + dff_chunk, :],
                        preferred_element_type=jnp.float32)

    z = xn + y + ln2_ref[0]                           # ln2_ref[0] = conv2 bias b2
    o_ref[...] = layernorm(z, ln2_ref[1], ln2_ref[2])


# --------------------------------------------------------------------------------------
# Wrapper
# --------------------------------------------------------------------------------------
def encoder_layer(x, params, *, attn_rows=512, max_dff_chunk=512,
                  score_budget_bytes=12 * 1024 * 1024):
    """x : (N, L, C=d_model) float32, returns (N, L, C) float32."""
    N, L, C = x.shape
    D = params["w1"].shape[1]
    Cp = _round_up(C, 128)        # lane-dense channel axis
    Dp = _round_up(D, 128)
    Lp = _round_up(L, 16)         # bf16 activations -> 16-row sublane packing
    scale = 1.0 / float(C) ** 0.5
    inv_c = 1.0 / float(C)
    f32, bf16 = jnp.float32, jnp.bfloat16

    # rows per grid step: as many batch elements as fit the row target AND the
    # (BN, Lp, Lp) score-memory budget; keep grid >= 2 so megacore can shard (v7x).
    bn_rows = max(1, attn_rows // Lp)
    bn_score = max(1, score_budget_bytes // max(1, Lp * Lp * 4 * 3))
    BN = max(1, min(N, bn_rows, bn_score))
    if N >= 2:
        BN = min(BN, -(-N // 2))
    Np = _round_up(N, BN)
    rows = BN * Lp
    grid = Np // BN

    # d_ff chunk: largest multiple of 128 <= max_dff_chunk that divides Dp
    m = Dp // 128
    dff_chunk = 128
    for d in range(max(1, max_dff_chunk // 128), 0, -1):
        if m % d == 0:
            dff_chunk = d * 128
            break
    n_chunks = Dp // dff_chunk

    # activations: zero-padded, channels-last, bf16
    x_p = _pad_to(x, (Np, Lp, Cp)).reshape(Np * Lp, Cp).astype(bf16)

    # weights: fused [Wq*scale | Wk | Wv] at 128-lane boundaries; all matmul weights bf16
    wqkv = jnp.concatenate(
        [_pad_to(params["wq"] * scale, (Cp, Cp)),
         _pad_to(params["wk"], (Cp, Cp)),
         _pad_to(params["wv"], (Cp, Cp))], axis=1).astype(bf16)
    wo = _pad_to(params["wo"], (Cp, Cp)).astype(bf16)
    w1 = _pad_to(params["w1"], (Cp, Dp)).astype(bf16)
    b1 = _pad_to(params["b1"], (1, Dp)).astype(f32)
    w2 = _pad_to(params["w2"], (Dp, Cp)).astype(bf16)
    ln1 = jnp.concatenate([_pad_to(params["g1"], (1, Cp)),
                           _pad_to(params["be1"], (1, Cp))], axis=0).astype(f32)
    ln2 = jnp.concatenate([_pad_to(params["b2"], (1, Cp)),
                           _pad_to(params["g2"], (1, Cp)),
                           _pad_to(params["be2"], (1, Cp))], axis=0).astype(f32)

    single_buf = _single_buffer_ok()

    def const_spec(shape):
        # constant index map -> block DMA'd once and stays resident; single-buffered
        # when supported so resident weights don't pay the 2x default buffering.
        if single_buf:
            return pl.BlockSpec(shape, lambda i: (0, 0),
                                pipeline_mode=pl.Buffered(1))
        return pl.BlockSpec(shape, lambda i: (0, 0))

    R = Np * Lp
    flops = int(2 * R * Cp * (3 * Cp + Cp + 2 * Dp) + 4 * Np * Lp * Lp * Cp)
    trans = int(Np * Lp * Lp + 3 * R)
    bytes_acc = int(2 * R * Cp + 4 * R * Cp
                    + 2 * (4 * Cp * Cp + 2 * Cp * Dp) + 4 * (Dp + 5 * Cp))

    kern = functools.partial(_encoder_layer_kernel, bn=BN, lp=Lp, l_real=L,
                             c_real=C, dff_chunk=dff_chunk, n_chunks=n_chunks,
                             inv_c=inv_c)

    out2d = pl.pallas_call(
        kern,
        out_shape=jax.ShapeDtypeStruct((R, Cp), f32),
        grid=(grid,),
        in_specs=[
            pl.BlockSpec((rows, Cp), lambda i: (i, 0)),   # x rows (bf16)
            const_spec((Cp, 3 * Cp)),                     # Wq*scale | Wk | Wv
            const_spec((Cp, Cp)),                         # Wo
            const_spec((2, Cp)),                          # [gamma1; beta1]
            const_spec((Cp, Dp)),                         # W1
            const_spec((1, Dp)),                          # b1
            const_spec((Dp, Cp)),                         # W2
            const_spec((3, Cp)),                          # [b2; gamma2; beta2]
        ],
        out_specs=pl.BlockSpec((rows, Cp), lambda i: (i, 0)),
        compiler_params=pltpu.CompilerParams(
            dimension_semantics=("parallel",),
            vmem_limit_bytes=_vmem_limit_bytes()),
        cost_estimate=pl.CostEstimate(flops=flops, transcendentals=trans,
                                      bytes_accessed=bytes_acc),
    )(x_p, wqkv, wo, ln1, w1, b1, w2, ln2)

    return out2d.reshape(Np, Lp, Cp)[:N, :L, :C]


# --------------------------------------------------------------------------------------
# Pure-JAX reference (f32)
# --------------------------------------------------------------------------------------
def encoder_layer_ref(x, params):
    C = x.shape[-1]
    scale = 1.0 / float(C) ** 0.5
    q = x @ params["wq"]
    k = x @ params["wk"]
    v = x @ params["wv"]
    s = jnp.einsum("nld,nmd->nlm", q, k) * scale
    p = jax.nn.softmax(s, axis=-1)
    attn_out = jnp.einsum("nlm,nmd->nld", p, v) @ params["wo"]

    def layernorm(t, g, b):
        mu = jnp.mean(t, axis=-1, keepdims=True)
        var = jnp.mean((t - mu) ** 2, axis=-1, keepdims=True)
        return (t - mu) * jax.lax.rsqrt(var + EPS) * g + b

    xn = layernorm(x + attn_out, params["g1"][0], params["be1"][0])
    h = jnp.maximum(xn @ params["w1"] + params["b1"][0], 0.0)
    y = h @ params["w2"] + params["b2"][0]
    return layernorm(xn + y, params["g2"][0], params["be2"][0])


def init_params(key, d_model, d_ff):
    ks = jax.random.split(key, 8)
    sd = 0.02
    return {
        "wq": sd * jax.random.normal(ks[0], (d_model, d_model), jnp.float32),
        "wk": sd * jax.random.normal(ks[1], (d_model, d_model), jnp.float32),
        "wv": sd * jax.random.normal(ks[2], (d_model, d_model), jnp.float32),
        "wo": sd * jax.random.normal(ks[3], (d_model, d_model), jnp.float32),
        "w1": sd * jax.random.normal(ks[4], (d_model, d_ff), jnp.float32),
        "b1": sd * jax.random.normal(ks[5], (1, d_ff), jnp.float32),
        "w2": sd * jax.random.normal(ks[6], (d_ff, d_model), jnp.float32),
        "b2": sd * jax.random.normal(ks[7], (1, d_model), jnp.float32),
        "g1": jnp.ones((1, d_model), jnp.float32),
        "be1": jnp.zeros((1, d_model), jnp.float32),
        "g2": jnp.ones((1, d_model), jnp.float32),
        "be2": jnp.zeros((1, d_model), jnp.float32),
    }


if __name__ == "__main__":
    # Small, deliberately non-aligned shapes (L=10, C=64) to exercise the padding/mask
    # paths; max_dff_chunk=128 exercises the chunked-FFN loop (Dp=256 -> 2 chunks).
    N, L, d_model = 2, 10, 64
    d_ff = 4 * d_model

    key = jax.random.PRNGKey(0)
    kx, kp = jax.random.split(key)
    x = jax.random.normal(kx, (N, L, d_model), jnp.float32)
    params = init_params(kp, d_model, d_ff)

    out = jax.block_until_ready(encoder_layer(x, params, max_dff_chunk=128))
    ref = encoder_layer_ref(x, params)

    assert out.shape == (N, L, d_model)
    max_err = float(jnp.max(jnp.abs(out - ref)))
    # bf16 activations + bf16 matmul operands (f32 accumulate) + approx reciprocal.
    assert jnp.allclose(out, ref, atol=2e-2, rtol=2e-2), (
        "mismatch vs reference: max abs err = %g" % max_err)

    print("KERNEL_OK")
</pallas_src>

<mosaic_0001>
module attributes {stable_mosaic.version = 11 : i64} {
  func.func @k(%arg0: i32, %arg1: memref<8x128xf32, #tpu.memory_space<vmem>>, %arg2: memref<8x128xf32, #tpu.memory_space<vmem>>) attributes {dimension_semantics = [#tpu.dimension_semantics<arbitrary>], iteration_bounds = array<i64: 1>, scalar_prefetch = 0 : i64, scratch_operands = 0 : i64, tpu.core_type = #tpu.core_type<tc>, window_params = [{pipeline_mode = #tpu.pipeline_mode<synchronous>, transform_indices = @transform_0, window_bounds = array<i64: 8, 128>}, {pipeline_mode = #tpu.pipeline_mode<synchronous>, transform_indices = @transform_1, window_bounds = array<i64: 8, 128>}]} {
    %c0 = arith.constant 0 : index
    %c0_0 = arith.constant 0 : index
    %0 = vector.load %arg1[%c0, %c0_0] : memref<8x128xf32, #tpu.memory_space<vmem>>, vector<8x128xf32>
    %cst = arith.constant 1.000000e+00 : f32
    %1 = vector.broadcast %cst : f32 to vector<8x128xf32>
    %2 = arith.addf %0, %1 : vector<8x128xf32>
    %c0_1 = arith.constant 0 : index
    %c0_2 = arith.constant 0 : index
    %3 = vector.load %arg2[%c0_1, %c0_2] : memref<8x128xf32, #tpu.memory_space<vmem>>, vector<8x128xf32>
    tpu.vector_store %arg2[%c0_1, %c0_2], %2 {strides = array<i32>} : memref<8x128xf32, #tpu.memory_space<vmem>>, vector<8x128xf32>,
    return
  }
  func.func @transform_0(%arg0: i32) -> (i32, i32) {
    %c0_i32 = arith.constant 0 : i32
    %c0_i32_0 = arith.constant 0 : i32
    %c0_i32_1 = arith.constant 0 : i32
    return %c0_i32, %c0_i32_0 : i32, i32
  }
  func.func @transform_1(%arg0: i32) -> (i32, i32) {
    %c0_i32 = arith.constant 0 : i32
    %c0_i32_0 = arith.constant 0 : i32
    %c0_i32_1 = arith.constant 0 : i32
    return %c0_i32, %c0_i32_0 : i32, i32
  }
}

module attributes {stable_mosaic.version = 11 : i64} {
  func.func @_encoder_layer_kernel(%arg0: i32, %arg1: memref<16x128xbf16, #tpu.memory_space<vmem>>, %arg2: memref<128x384xbf16, #tpu.memory_space<vmem>>, %arg3: memref<128x128xbf16, #tpu.memory_space<vmem>>, %arg4: memref<2x128xf32, #tpu.memory_space<vmem>>, %arg5: memref<128x256xbf16, #tpu.memory_space<vmem>>, %arg6: memref<1x256xf32, #tpu.memory_space<vmem>>, %arg7: memref<256x128xbf16, #tpu.memory_space<vmem>>, %arg8: memref<3x128xf32, #tpu.memory_space<vmem>>, %arg9: memref<16x128xf32, #tpu.memory_space<vmem>>) attributes {dimension_semantics = [#tpu.dimension_semantics<parallel>], iteration_bounds = array<i64: 2>, scalar_prefetch = 0 : i64, scratch_operands = 0 : i64, tpu.core_type = #tpu.core_type<tc>, window_params = [{transform_indices = @transform_0, window_bounds = array<i64: 16, 128>}, {pipeline_mode = #tpu.pipeline_mode<synchronous>, transform_indices = @transform_1, window_bounds = array<i64: 128, 384>}, {pipeline_mode = #tpu.pipeline_mode<synchronous>, transform_indices = @transform_2, window_bounds = array<i64: 128, 128>}, {pipeline_mode = #tpu.pipeline_mode<synchronous>, transform_indices = @transform_3, window_bounds = array<i64: 2, 128>}, {pipeline_mode = #tpu.pipeline_mode<synchronous>, transform_indices = @transform_4, window_bounds = array<i64: 128, 256>}, {pipeline_mode = #tpu.pipeline_mode<synchronous>, transform_indices = @transform_5, window_bounds = array<i64: 1, 256>}, {pipeline_mode = #tpu.pipeline_mode<synchronous>, transform_indices = @transform_6, window_bounds = array<i64: 256, 128>}, {pipeline_mode = #tpu.pipeline_mode<synchronous>, transform_indices = @transform_7, window_bounds = array<i64: 3, 128>}, {transform_indices = @transform_8, window_bounds = array<i64: 16, 128>}]} {
    %c0 = arith.constant 0 : index
    %c0_0 = arith.constant 0 : index
    %0 = vector.load %arg1[%c0, %c0_0] : memref<16x128xbf16, #tpu.memory_space<vmem>>, vector<16x128xbf16>
    %1 = arith.extf %0 : vector<16x128xbf16> to vector<16x128xf32>
    %2 = tpu.iota {dimensions = array<i32: 1>} : vector<1x128xi32>
    %c64_i32 = arith.constant 64 : i32
    %3 = vector.broadcast %c64_i32 : i32 to vector<1x128xi32>
    %4 = arith.cmpi slt, %2, %3 : vector<1x128xi32>
    %c0_1 = arith.constant 0 : index
    %c0_2 = arith.constant 0 : index
    %5 = vector.load %arg2[%c0_1, %c0_2] : memref<128x384xbf16, #tpu.memory_space<vmem>>, vector<128x384xbf16>
    %cst = arith.constant dense<0.000000e+00> : vector<16x384xf32>
    %6 = tpu.matmul %0, %5, %cst {dimension_numbers = #tpu.dot_dimension_numbers<[1], [0], [0], [1], [0, 0, 1, 1], [], []>} : vector<16x128xbf16>, vector<128x384xbf16>, vector<16x384xf32> -> vector<16x384xf32>
    %7 = vector.extract_strided_slice %6 {offsets = [0, 0], sizes = [16, 128], strides = [1, 1]} : vector<16x384xf32> to vector<16x128xf32>
    %8 = vector.shape_cast %7 : vector<16x128xf32> to vector<1x16x128xf32>
    %9 = arith.truncf %8 : vector<1x16x128xf32> to vector<1x16x128xbf16>
    %10 = vector.extract_strided_slice %6 {offsets = [0, 128], sizes = [16, 128], strides = [1, 1]} : vector<16x384xf32> to vector<16x128xf32>
    %11 = vector.shape_cast %10 : vector<16x128xf32> to vector<1x16x128xf32>
    %12 = arith.truncf %11 : vector<1x16x128xf32> to vector<1x16x128xbf16>
    %13 = vector.extract_strided_slice %6 {offsets = [0, 256], sizes = [16, 128], strides = [1, 1]} : vector<16x384xf32> to vector<16x128xf32>
    %14 = vector.shape_cast %13 : vector<16x128xf32> to vector<1x16x128xf32>
    %15 = arith.truncf %14 : vector<1x16x128xf32> to vector<1x16x128xbf16>
    "tpu.trace_start"() <{level = 10 : i32, message = "bqd,bkd->bqk"}> : () -> ()
    %cst_3 = arith.constant dense<0.000000e+00> : vector<1x16x16xf32>
    %16 = tpu.matmul %9, %12, %cst_3 {dimension_numbers = #tpu.dot_dimension_numbers<[2], [2], [1], [1], [0, 0, 0, 1, 1, 1], [0], [0]>} : vector<1x16x128xbf16>, vector<1x16x128xbf16>, vector<1x16x16xf32> -> vector<1x16x16xf32>
    "tpu.trace_stop"() : () -> ()
    %17 = tpu.iota {dimensions = array<i32: 2>} : vector<1x1x16xi32>
    %c10_i32 = arith.constant 10 : i32
    %18 = vector.broadcast %c10_i32 : i32 to vector<1x1x16xi32>
    %19 = arith.cmpi slt, %17, %18 : vector<1x1x16xi32>
    %cst_4 = arith.constant -1.000000e+30 : f32
    %20 = vector.shape_cast %19 : vector<1x1x16xi1> to vector<1x1x16xi1>
    %21 = vector.broadcast %20 : vector<1x1x16xi1> to vector<1x16x16xi1>
    %22 = vector.broadcast %cst_4 : f32 to vector<1x16x16xf32>
    %23 = arith.select %21, %16, %22 : vector<1x16x16xi1>, vector<1x16x16xf32>
    %cst_5 = arith.constant dense<0xFF800000> : vector<1x16xf32>
    %24 = vector.multi_reduction <maximumf>, %23, %cst_5 [2] : vector<1x16x16xf32> to vector<1x16xf32>
    %25 = vector.shape_cast %24 : vector<1x16xf32> to vector<1x16x1xf32>
    %26 = vector.broadcast %25 : vector<1x16x1xf32> to vector<1x16x16xf32>
    %27 = arith.subf %23, %26 : vector<1x16x16xf32>
    %28 = math.exp %27 : vector<1x16x16xf32>
    %cst_6 = arith.constant dense<0.000000e+00> : vector<1x16xf32>
    %29 = vector.multi_reduction <add>, %28, %cst_6 [2] : vector<1x16x16xf32> to vector<1x16xf32>
    %30 = vector.shape_cast %29 : vector<1x16xf32> to vector<1x16x1xf32>
    %31 = tpu.reciprocal %30 {approx = true} : vector<1x16x1xf32> -> vector<1x16x1xf32>
    %32 = vector.broadcast %31 : vector<1x16x1xf32> to vector<1x16x16xf32>
    %33 = arith.mulf %28, %32 : vector<1x16x16xf32>
    %34 = arith.truncf %33 : vector<1x16x16xf32> to vector<1x16x16xbf16>
    "tpu.trace_start"() <{level = 10 : i32, message = "bqk,bkd->bqd"}> : () -> ()
    %cst_7 = arith.constant dense<0.000000e+00> : vector<1x16x128xf32>
    %35 = tpu.matmul %34, %15, %cst_7 {dimension_numbers = #tpu.dot_dimension_numbers<[2], [1], [1], [2], [0, 0, 0, 1, 1, 2], [0], [0]>} : vector<1x16x16xbf16>, vector<1x16x128xbf16>, vector<1x16x128xf32> -> vector<1x16x128xf32>
    "tpu.trace_stop"() : () -> ()
    %36 = vector.shape_cast %35 : vector<1x16x128xf32> to vector<16x128xf32>
    %37 = arith.truncf %36 : vector<16x128xf32> to vector<16x128xbf16>
    %c0_8 = arith.constant 0 : index
    %c0_9 = arith.constant 0 : index
    %38 = vector.load %arg3[%c0_8, %c0_9] : memref<128x128xbf16, #tpu.memory_space<vmem>>, vector<128x128xbf16>
    %cst_10 = arith.constant dense<0.000000e+00> : vector<16x128xf32>
    %39 = tpu.matmul %37, %38, %cst_10 {dimension_numbers = #tpu.dot_dimension_numbers<[1], [0], [0], [1], [0, 0, 1, 1], [], []>} : vector<16x128xbf16>, vector<128x128xbf16>, vector<16x128xf32> -> vector<16x128xf32>
    %40 = arith.addf %1, %39 : vector<16x128xf32>
    %c0_11 = arith.constant 0 : index
    %c0_12 = arith.constant 0 : index
    %41 = vector.load %arg4[%c0_11, %c0_12] : memref<2x128xf32, #tpu.memory_space<vmem>>, vector<1x128xf32>
    %42 = vector.shape_cast %41 : vector<1x128xf32> to vector<128xf32>
    %c1 = arith.constant 1 : index
    %c0_13 = arith.constant 0 : index
    %43 = vector.load %arg4[%c1, %c0_13] : memref<2x128xf32, #tpu.memory_space<vmem>>, vector<1x128xf32>
    %44 = vector.shape_cast %43 : vector<1x128xf32> to vector<128xf32>
    %cst_14 = arith.constant dense<0.000000e+00> : vector<16xf32>
    %45 = vector.multi_reduction <add>, %40, %cst_14 [1] : vector<16x128xf32> to vector<16xf32>
    %46 = vector.shape_cast %45 : vector<16xf32> to vector<16x1xf32>
    %cst_15 = arith.constant 1.562500e-02 : f32
    %47 = vector.broadcast %cst_15 : f32 to vector<16x1xf32>
    %48 = arith.mulf %46, %47 : vector<16x1xf32>
    %49 = vector.broadcast %48 : vector<16x1xf32> to vector<16x128xf32>
    %50 = arith.subf %40, %49 : vector<16x128xf32>
    %cst_16 = arith.constant 0.000000e+00 : f32
    %51 = vector.shape_cast %4 : vector<1x128xi1> to vector<1x128xi1>
    %52 = vector.broadcast %51 : vector<1x128xi1> to vector<16x128xi1>
    %53 = vector.broadcast %cst_16 : f32 to vector<16x128xf32>
    %54 = arith.select %52, %50, %53 : vector<16x128xi1>, vector<16x128xf32>
    %55 = arith.mulf %54, %54 : vector<16x128xf32>
    %cst_17 = arith.constant dense<0.000000e+00> : vector<16xf32>
    %56 = vector.multi_reduction <add>, %55, %cst_17 [1] : vector<16x128xf32> to vector<16xf32>
    %57 = vector.shape_cast %56 : vector<16xf32> to vector<16x1xf32>
    %cst_18 = arith.constant 1.562500e-02 : f32
    %58 = vector.broadcast %cst_18 : f32 to vector<16x1xf32>
    %59 = arith.mulf %57, %58 : vector<16x1xf32>
    %cst_19 = arith.constant 9.99999974E-6 : f32
    %60 = vector.broadcast %cst_19 : f32 to vector<16x1xf32>
    %61 = arith.addf %59, %60 : vector<16x1xf32>
    %62 = math.rsqrt %61 : vector<16x1xf32>
    %63 = vector.broadcast %62 : vector<16x1xf32> to vector<16x128xf32>
    %64 = arith.mulf %50, %63 : vector<16x128xf32>
    %65 = vector.shape_cast %42 : vector<128xf32> to vector<1x128xf32>
    %66 = vector.broadcast %65 : vector<1x128xf32> to vector<16x128xf32>
    %67 = arith.mulf %64, %66 : vector<16x128xf32>
    %68 = vector.shape_cast %44 : vector<128xf32> to vector<1x128xf32>
    %69 = vector.broadcast %68 : vector<1x128xf32> to vector<16x128xf32>
    %70 = arith.addf %67, %69 : vector<16x128xf32>
    %71 = arith.truncf %70 : vector<16x128xf32> to vector<16x128xbf16>
    %cst_20 = arith.constant 0.000000e+00 : f32
    %72 = vector.broadcast %cst_20 : f32 to vector<16x128xf32>
    %c0_21 = arith.constant 0 : index
    %c0_22 = arith.constant 0 : index
    %73 = vector.load %arg5[%c0_21, %c0_22] : memref<128x256xbf16, #tpu.memory_space<vmem>>, vector<128x128xbf16>
    %cst_23 = arith.constant dense<0.000000e+00> : vector<16x128xf32>
    %74 = tpu.matmul %71, %73, %cst_23 {dimension_numbers = #tpu.dot_dimension_numbers<[1], [0], [0], [1], [0, 0, 1, 1], [], []>} : vector<16x128xbf16>, vector<128x128xbf16>, vector<16x128xf32> -> vector<16x128xf32>
    %c0_24 = arith.constant 0 : index
    %c0_25 = arith.constant 0 : index
    %75 = vector.load %arg6[%c0_24, %c0_25] : memref<1x256xf32, #tpu.memory_space<vmem>>, vector<1x128xf32>
    %76 = vector.broadcast %75 : vector<1x128xf32> to vector<16x128xf32>
    %77 = arith.addf %74, %76 : vector<16x128xf32>
    %cst_26 = arith.constant 0.000000e+00 : f32
    %78 = vector.broadcast %cst_26 : f32 to vector<16x128xf32>
    %79 = arith.maximumf %77, %78 : vector<16x128xf32>
    %80 = arith.truncf %79 : vector<16x128xf32> to vector<16x128xbf16>
    %c0_27 = arith.constant 0 : index
    %c0_28 = arith.constant 0 : index
    %81 = vector.load %arg7[%c0_27, %c0_28] : memref<256x128xbf16, #tpu.memory_space<vmem>>, vector<128x128xbf16>
    %cst_29 = arith.constant dense<0.000000e+00> : vector<16x128xf32>
    %82 = tpu.matmul %80, %81, %cst_29 {dimension_numbers = #tpu.dot_dimension_numbers<[1], [0], [0], [1], [0, 0, 1, 1], [], []>} : vector<16x128xbf16>, vector<128x128xbf16>, vector<16x128xf32> -> vector<16x128xf32>
    %83 = arith.addf %72, %82 : vector<16x128xf32>
    %c0_30 = arith.constant 0 : index
    %c128 = arith.constant 128 : index
    %84 = vector.load %arg5[%c0_30, %c128] : memref<128x256xbf16, #tpu.memory_space<vmem>>, vector<128x128xbf16>
    %cst_31 = arith.constant dense<0.000000e+00> : vector<16x128xf32>
    %85 = tpu.matmul %71, %84, %cst_31 {dimension_numbers = #tpu.dot_dimension_numbers<[1], [0], [0], [1], [0, 0, 1, 1], [], []>} : vector<16x128xbf16>, vector<128x128xbf16>, vector<16x128xf32> -> vector<16x128xf32>
    %c0_32 = arith.constant 0 : index
    %c128_33 = arith.constant 128 : index
    %86 = vector.load %arg6[%c0_32, %c128_33] : memref<1x256xf32, #tpu.memory_space<vmem>>, vector<1x128xf32>
    %87 = vector.broadcast %86 : vector<1x128xf32> to vector<16x128xf32>
    %88 = arith.addf %85, %87 : vector<16x128xf32>
    %cst_34 = arith.constant 0.000000e+00 : f32
    %89 = vector.broadcast %cst_34 : f32 to vector<16x128xf32>
    %90 = arith.maximumf %88, %89 : vector<16x128xf32>
    %91 = arith.truncf %90 : vector<16x128xf32> to vector<16x128xbf16>
    %c128_35 = arith.constant 128 : index
    %c0_36 = arith.constant 0 : index
    %92 = vector.load %arg7[%c128_35, %c0_36] : memref<256x128xbf16, #tpu.memory_space<vmem>>, vector<128x128xbf16>
    %cst_37 = arith.constant dense<0.000000e+00> : vector<16x128xf32>
    %93 = tpu.matmul %91, %92, %cst_37 {dimension_numbers = #tpu.dot_dimension_numbers<[1], [0], [0], [1], [0, 0, 1, 1], [], []>} : vector<16x128xbf16>, vector<128x128xbf16>, vector<16x128xf32> -> vector<16x128xf32>
    %94 = arith.addf %83, %93 : vector<16x128xf32>
    %95 = arith.addf %70, %94 : vector<16x128xf32>
    %c0_38 = arith.constant 0 : index
    %c0_39 = arith.constant 0 : index
    %96 = vector.load %arg8[%c0_38, %c0_39] : memref<3x128xf32, #tpu.memory_space<vmem>>, vector<1x128xf32>
    %97 = vector.shape_cast %96 : vector<1x128xf32> to vector<128xf32>
    %98 = vector.shape_cast %97 : vector<128xf32> to vector<1x128xf32>
    %99 = vector.broadcast %98 : vector<1x128xf32> to vector<16x128xf32>
    %100 = arith.addf %95, %99 : vector<16x128xf32>
    %c1_40 = arith.constant 1 : index
    %c0_41 = arith.constant 0 : index
    %101 = vector.load %arg8[%c1_40, %c0_41] : memref<3x128xf32, #tpu.memory_space<vmem>>, vector<1x128xf32>
    %102 = vector.shape_cast %101 : vector<1x128xf32> to vector<128xf32>
    %c2 = arith.constant 2 : index
    %c0_42 = arith.constant 0 : index
    %103 = vector.load %arg8[%c2, %c0_42] : memref<3x128xf32, #tpu.memory_space<vmem>>, vector<1x128xf32>
    %104 = vector.shape_cast %103 : vector<1x128xf32> to vector<128xf32>
    %cst_43 = arith.constant dense<0.000000e+00> : vector<16xf32>
    %105 = vector.multi_reduction <add>, %100, %cst_43 [1] : vector<16x128xf32> to vector<16xf32>
    %106 = vector.shape_cast %105 : vector<16xf32> to vector<16x1xf32>
    %cst_44 = arith.constant 1.562500e-02 : f32
    %107 = vector.broadcast %cst_44 : f32 to vector<16x1xf32>
    %108 = arith.mulf %106, %107 : vector<16x1xf32>
    %109 = vector.broadcast %108 : vector<16x1xf32> to vector<16x128xf32>
    %110 = arith.subf %100, %109 : vector<16x128xf32>
    %cst_45 = arith.constant 0.000000e+00 : f32
    %111 = vector.shape_cast %4 : vector<1x128xi1> to vector<1x128xi1>
    %112 = vector.broadcast %111 : vector<1x128xi1> to vector<16x128xi1>
    %113 = vector.broadcast %cst_45 : f32 to vector<16x128xf32>
    %114 = arith.select %112, %110, %113 : vector<16x128xi1>, vector<16x128xf32>
    %115 = arith.mulf %114, %114 : vector<16x128xf32>
    %cst_46 = arith.constant dense<0.000000e+00> : vector<16xf32>
    %116 = vector.multi_reduction <add>, %115, %cst_46 [1] : vector<16x128xf32> to vector<16xf32>
    %117 = vector.shape_cast %116 : vector<16xf32> to vector<16x1xf32>
    %cst_47 = arith.constant 1.562500e-02 : f32
    %118 = vector.broadcast %cst_47 : f32 to vector<16x1xf32>
    %119 = arith.mulf %117, %118 : vector<16x1xf32>
    %cst_48 = arith.constant 9.99999974E-6 : f32
    %120 = vector.broadcast %cst_48 : f32 to vector<16x1xf32>
    %121 = arith.addf %119, %120 : vector<16x1xf32>
    %122 = math.rsqrt %121 : vector<16x1xf32>
    %123 = vector.broadcast %122 : vector<16x1xf32> to vector<16x128xf32>
    %124 = arith.mulf %110, %123 : vector<16x128xf32>
    %125 = vector.shape_cast %102 : vector<128xf32> to vector<1x128xf32>
    %126 = vector.broadcast %125 : vector<1x128xf32> to vector<16x128xf32>
    %127 = arith.mulf %124, %126 : vector<16x128xf32>
    %128 = vector.shape_cast %104 : vector<128xf32> to vector<1x128xf32>
    %129 = vector.broadcast %128 : vector<1x128xf32> to vector<16x128xf32>
    %130 = arith.addf %127, %129 : vector<16x128xf32>
    %c0_49 = arith.constant 0 : index
    %c0_50 = arith.constant 0 : index
    %131 = vector.load %arg9[%c0_49, %c0_50] : memref<16x128xf32, #tpu.memory_space<vmem>>, vector<16x128xf32>
    tpu.vector_store %arg9[%c0_49, %c0_50], %130 {strides = array<i32>} : memref<16x128xf32, #tpu.memory_space<vmem>>, vector<16x128xf32>,
    return
  }
  func.func @transform_0(%arg0: i32) -> (i32, i32) {
    %c0_i32 = arith.constant 0 : i32
    %c0_i32_0 = arith.constant 0 : i32
    return %arg0, %c0_i32 : i32, i32
  }
  func.func @transform_1(%arg0: i32) -> (i32, i32) {
    %c0_i32 = arith.constant 0 : i32
    %c0_i32_0 = arith.constant 0 : i32
    %c0_i32_1 = arith.constant 0 : i32
    return %c0_i32, %c0_i32_0 : i32, i32
  }
  func.func @transform_2(%arg0: i32) -> (i32, i32) {
    %c0_i32 = arith.constant 0 : i32
    %c0_i32_0 = arith.constant 0 : i32
    %c0_i32_1 = arith.constant 0 : i32
    return %c0_i32, %c0_i32_0 : i32, i32
  }
  func.func @transform_3(%arg0: i32) -> (i32, i32) {
    %c0_i32 = arith.constant 0 : i32
    %c0_i32_0 = arith.constant 0 : i32
    %c0_i32_1 = arith.constant 0 : i32
    return %c0_i32, %c0_i32_0 : i32, i32
  }
  func.func @transform_4(%arg0: i32) -> (i32, i32) {
    %c0_i32 = arith.constant 0 : i32
    %c0_i32_0 = arith.constant 0 : i32
    %c0_i32_1 = arith.constant 0 : i32
    return %c0_i32, %c0_i32_0 : i32, i32
  }
  func.func @transform_5(%arg0: i32) -> (i32, i32) {
    %c0_i32 = arith.constant 0 : i32
    %c0_i32_0 = arith.constant 0 : i32
    %c0_i32_1 = arith.constant 0 : i32
    return %c0_i32, %c0_i32_0 : i32, i32
  }
  func.func @transform_6(%arg0: i32) -> (i32, i32) {
    %c0_i32 = arith.constant 0 : i32
    %c0_i32_0 = arith.constant 0 : i32
    %c0_i32_1 = arith.constant 0 : i32
    return %c0_i32, %c0_i32_0 : i32, i32
  }
  func.func @transform_7(%arg0: i32) -> (i32, i32) {
    %c0_i32 = arith.constant 0 : i32
    %c0_i32_0 = arith.constant 0 : i32
    %c0_i32_1 = arith.constant 0 : i32
    return %c0_i32, %c0_i32_0 : i32, i32
  }
  func.func @transform_8(%arg0: i32) -> (i32, i32) {
    %c0_i32 = arith.constant 0 : i32
    %c0_i32_0 = arith.constant 0 : i32
    return %arg0, %c0_i32 : i32, i32
  }
}

</mosaic_0001>

<bundles_post_ra>
// kernel: tpu_custom_call.1
= control target key start
LH: loop header
LB: loop body
LE: loop exit
PB: predicated region body
PF: predicated region fallthrough
CT: control target
= control target key end

     0   :  { %6 = vsyncpa [#allocation3], 0  ;;  %s125_s0 = inlined_call_operand.hbm [shape: f32[8,128], index: 0, kind: input, shape index: {}]   ;;  %s126_s1 = inlined_call_operand.hbm [shape: f32[8,128], index: 1, kind: output, shape index: {}]  }
   0x1   :  { %7 = vsyncpa [#allocation4], 0  ;;  %s89_s6 = smov [#allocation2]   ;;  %s41_s10 = scalar_lea.hbm %s125_s0, 128 }
   0x2   :  { %s14_s7 = sshll.u32 %s89_s6, 4  ;;  %p42_p0 = scmp.ne.s32.totalorder %s125_s0, %s41_s10  ;;  %s15_s7 = int_to_ptr.vmem [resolvable:$true] %s14_s7 }
   0x3   :  { %p45_p1 = scmp.lt.u32.totalorder %s41_s10, %s125_s0 }
   0x5   :  { %p47_p2 = pnand %p45_p1, %p42_p0 }
   0x7   :  { %50 = shalt.err (!%p47_p2)
}
   0x8   :  { %s51_s15 = scalar_lea.vmem %s15_s7, 128  ;;  %p56_p4 = scmp.lt.s32.totalorder %s15_s7, %s15_s7 }
   0x9   :  { %p52_p3 = scmp.ne.s32.totalorder %s15_s7, %s51_s15  ;;  %p57_p5 = scmp.lt.s32.totalorder %s51_s15, %s51_s15 }
   0xb   :  { %p58_p6 = por %p57_p5, %p56_p4 }
   0xd   :  { %p59_p7 = pnand %p58_p6, %p52_p3 }
   0xf   :  { %62 = shalt.err (!%p59_p7)
}
  0x10   :  { %17 = dma.hbm_to_vmem [thread:$0]  %s125_s0, 128, %s15_s7, [#allocation3]  }
  0x11   :  { %85 = dma.done.wait [#allocation3], 128  }
  0x12   :  { %86 = vsyncadd [#allocation3], 4294967168  ;;  %s90_s18 = smov [#allocation5]   ;;  %v21_v0 = vld [vmem:[#allocation2] sm:$0xff] }
  0x13   :  { %s30_s19 = sshll.u32 %s90_s18, 4  ;;  %v22_v1 = vadd.f32 1.0, %v21_v0  ;;  %s31_s19 = int_to_ptr.vmem [resolvable:$true] %s30_s19 }
  0x14   :  { %s63_s20 = scalar_lea.vmem %s31_s19, 128  ;;  %p68_p9 = scmp.lt.s32.totalorder %s31_s19, %s31_s19 }
  0x15   :  { %23 = vst [vmem:[#allocation5] sm:$0xff] %v22_v1  ;;  %p64_p8 = scmp.ne.s32.totalorder %s31_s19, %s63_s20  ;;  %p69_p10 = scmp.lt.s32.totalorder %s63_s20, %s63_s20 }
  0x17   :  { %p70_p11 = por %p69_p10, %p68_p9 }
  0x19   :  { %p71_p12 = pnand %p70_p11, %p64_p8 }
  0x1b   :  { %74 = shalt.err (!%p71_p12)
}
  0x1c   :  { %s75_s23 = scalar_lea.hbm %s126_s1, 128 }
  0x1d   :  { %p76_p13 = scmp.ne.s32.totalorder %s126_s1, %s75_s23  ;;  %p79_p0 = scmp.lt.u32.totalorder %s75_s23, %s126_s1 }
  0x1f   :  { %p81_p1 = pnand %p79_p0, %p76_p13 }
  0x21   :  { %84 = shalt.err (!%p81_p1)
}
  0x22   :  { %33 = dma.vmem_to_hbm [thread:$0]  %s31_s19, 128, %s126_s1, [#allocation4]  }
  0x23   :  { %87 = dma.done.wait [#allocation4], 128  }
  0x24   :  { %88 = vsyncadd [#allocation4], 4294967168 }
  0x25   :  { %37 = vsyncpa [#allocation3], 1 }
  0x26   :  { %38 = vsyncpa [#allocation4], 1 }

// kernel: tpu_custom_call.1
= control target key start
LH: loop header
LB: loop body
LE: loop exit
PB: predicated region body
PF: predicated region fallthrough
CT: control target
= control target key end

     0   :  { %s2682_s0 = inlined_call_operand.hbm [shape: bf16[32,128], index: 0, kind: input, shape index: {}]   ;;  %s2683_s1 = inlined_call_operand.hbm [shape: bf16[128,384], index: 1, kind: input, shape index: {}]   ;;  %s2684_s2 = inlined_call_operand.hbm [shape: bf16[128,128], index: 2, kind: input, shape index: {}]   ;;  %s2685_s3 = inlined_call_operand.vmem [shape: f32[2,128], index: 3, kind: input, shape index: {}]   ;;  %s2686_s4 = inlined_call_operand.hbm [shape: bf16[128,256], index: 4, kind: input, shape index: {}]   ;;  %s2687_s5 = inlined_call_operand.vmem [shape: f32[1,256], index: 5, kind: input, shape index: {}]   ;;  %s2688_s6 = inlined_call_operand.hbm [shape: bf16[256,128], index: 6, kind: input, shape index: {}]   ;;  %s2689_s7 = inlined_call_operand.vmem [shape: f32[3,128], index: 7, kind: input, shape index: {}]   ;;  %s2690_s8 = inlined_call_operand.hbm [shape: f32[32,128], index: 8, kind: output, shape index: {}]  }
   0x1   :  { %2695 = sst [smem:[#allocation17_spill]] %s2683_s1 }
   0x2   :  { %13 = vsyncpa [#allocation3], 0 }
   0x3   :  { %15 = vsyncpa [#allocation3 + $0x1], 0 }
   0x4   :  { %16 = vsyncpa [#allocation6], 0 }
   0x5   :  { %17 = vsyncpa [#allocation9], 0 }
   0x6   :  { %18 = vsyncpa [#allocation4], 0 }
   0x7   :  { %20 = vsyncpa [#allocation4 + $0x1], 0  ;;  %s2277_s27 = smov 0   ;;  %s2279_s28 = smov 0  }
   0x8   :  { %s2281_s29 = smov 0   ;;  %s2283_s30 = smov 0  }
   0x9 LB: > { %s2298_s9 = sadd.s32 4294967295, %s2213_s30   ;;  %s1522_s10 = sadd.s32 4294967294, %s2213_s30   ;;  %s2213_s30 = sphi %s2283_s30, %s2718_s30   ;;  %s2209_s29 = sphi %s2281_s29, %s2717_s29   ;;  %s2205_s28 = sphi %s2279_s28, %s2716_s28   ;;  %s2201_s27 = sphi %s2277_s27, %s2715_s27  }
   0xa   : > { %p46_p0 = scmp.ne.s32.totalorder %s2205_s28, %s2201_s27  ;;  %p2691_p1 = scmp.eq.s32.totalorder %s2298_s9, 0 }
   0xb   : > { %p223_p3 = scmp.eq.s32.totalorder %s1522_s10, 1  ;;  %p1523_p5 = scmp.ge.s32.totalorder %s2213_s30, 1 }
   0xc   : > { %p2307_p4 = por %p2691_p1, %p46_p0  ;;  %p230_p7 = scmp.lt.s32.totalorder %s2213_s30, 3 }
   0xd   : > { %p2312_p6 = por %p223_p3, %p46_p0  ;;  %s2215_s14 = smov [#allocation5]  }
   0xe   : > { %s2696_s11 = scalar_select %p2307_p4, 1, 0 }
   0xf   : > { %s2697_s12 = scalar_select %p2312_p6, 1, 0 }
  0x10   : > { %p2317_p8 = pnand %p1523_p5, %p230_p7  ;;  %s242_s15 = sshll.u32 %s2215_s14, 4  ;;  %s2321_s15 = int_to_ptr.vmem [resolvable:$true] %s242_s15 }
  0x11   : > { %2698 = sst [smem:[#allocation16_spill]] %s2697_s12  ;;  %s2216_s17 = smov [#allocation8]  }
  0x12   : > { %s2699_s13 = scalar_select %p2317_p8, 1, 0 }
  0x13   : > { %p1829_p9 = pneg %p2317_p8  ;;  %s271_s18 = sshll.u32 %s2216_s17, 4  ;;  %s2332_s18 = int_to_ptr.vmem [resolvable:$true] %s271_s18 }
  0x14   : > { %s2701_s1 = sld [smem:[#allocation17_spill]] }
  0x15   : > { %p2328_p11 = pnand %p1829_p9, %p2691_p1 }
  0x17   : > { %p2342_p13 = pneg %p2328_p11 }
  0x1a   : > { %s1997_s21 = scalar_lea.hbm %s2701_s1, 3072 }
  0x1b   : > { %p1998_p12 = scmp.ne.s32.totalorder %s2701_s1, %s1997_s21  ;;  %p2004_p5 = scmp.lt.u32.totalorder %s1997_s21, %s2701_s1 }
  0x1d   : > { %p2000_p0 = pnand %p2342_p13, %p1998_p12 }
  0x1f   : > { %p2001_p3 = pneg %p2000_p0 }
  0x21   : > { %p2006_p7 = pnand %p2004_p5, %p2001_p3 }
  0x23   : > { %2009 = shalt.err (!%p2006_p7)
}
  0x24   : > { %s2010_s10 = scalar_lea.vmem %s2321_s15, 3072  ;;  %p2018_p2 = scmp.lt.s32.totalorder %s2321_s15, %s2321_s15 }
  0x25   : > { %p2011_p9 = scmp.ne.s32.totalorder %s2321_s15, %s2010_s10  ;;  %p2019_p6 = scmp.lt.s32.totalorder %s2010_s10, %s2010_s10 }
  0x27   : > { %p2013_p10 = pnand %p2011_p9, %p2342_p13  ;;  %p2020_p12 = por %p2019_p6, %p2018_p2 }
  0x29   : > { %p2014_p1 = pneg %p2013_p10 }
  0x2b   : > { %p2021_p0 = pnand %p2020_p12, %p2014_p1 }
  0x2d   : > { %2024 = shalt.err (!%p2021_p0)
}
  0x2e   : > { %s2217_s14 = smov 192   ;;  %s2218_s17 = smov 12  }
  0x2f   : > { %1832 = dma.hbm_to_vmem [thread:$0]  (!%p2328_p11), %s2701_s1, 3072, %s2321_s15, [#allocation6], %s2217_s14, %s2217_s14, %s2218_s17  }
  0x30   : > { %s2025_s23 = scalar_lea.hbm %s2686_s4, 2048 }
  0x31   : > { %p2026_p2 = scmp.ne.s32.totalorder %s2686_s4, %s2025_s23  ;;  %p2032_p10 = scmp.lt.u32.totalorder %s2025_s23, %s2686_s4 }
  0x33   : > { %p2028_p1 = pnand %p2026_p2, %p2342_p13 }
  0x35   : > { %p2029_p6 = pneg %p2028_p1 }
  0x37   : > { %p2034_p3 = pnand %p2032_p10, %p2029_p6 }
  0x39   : > { %2037 = shalt.err (!%p2034_p3)
}
  0x3a   : > { %s2038_s15 = scalar_lea.vmem %s2332_s18, 2048  ;;  %p2046_p12 = scmp.lt.s32.totalorder %s2332_s18, %s2332_s18 }
  0x3b   : > { %p2039_p5 = scmp.ne.s32.totalorder %s2332_s18, %s2038_s15  ;;  %p2047_p0 = scmp.lt.s32.totalorder %s2038_s15, %s2038_s15 }
  0x3d   : > { %p2041_p7 = pnand %p2039_p5, %p2342_p13  ;;  %p2048_p2 = por %p2047_p0, %p2046_p12 }
  0x3f   : > { %p2042_p9 = pneg %p2041_p7 }
  0x41   : > { %p2049_p1 = pnand %p2048_p2, %p2042_p9 }
  0x43   : > { %2052 = shalt.err (!%p2049_p1)
}
  0x44   : > { %s2219_s14 = smov 128   ;;  %s2220_s12 = smov 8  }
  0x45   : > { %1838 = dma.hbm_to_vmem [thread:$0]  (!%p2328_p11), %s2686_s4, 2048, %s2332_s18, [#allocation9], %s2219_s14, %s2219_s14, %s2220_s12  }
  0x46   : > { %s2221_s20 = smov [#allocation7]   ;;  %s2053_s25 = scalar_lea.hbm %s2684_s2, 1024 }
  0x47   : > { %s255_s21 = sshll.u32 %s2221_s20, 4  ;;  %p2054_p6 = scmp.ne.s32.totalorder %s2684_s2, %s2053_s25  ;;  %s256_s21 = int_to_ptr.vmem [resolvable:$true] %s255_s21 }
  0x48   : > { %p2060_p5 = scmp.lt.u32.totalorder %s2053_s25, %s2684_s2 }
  0x49   : > { %p2056_p10 = pnand %p2054_p6, %p2342_p13 }
  0x4b   : > { %p2057_p3 = pneg %p2056_p10 }
  0x4d   : > { %p2062_p7 = pnand %p2060_p5, %p2057_p3 }
  0x4f   : > { %2065 = shalt.err (!%p2062_p7)
}
  0x50   : > { %s2066_s18 = scalar_lea.vmem %s256_s21, 1024  ;;  %p2074_p2 = scmp.lt.s32.totalorder %s256_s21, %s256_s21 }
  0x51   : > { %p2067_p9 = scmp.ne.s32.totalorder %s256_s21, %s2066_s18  ;;  %p2075_p1 = scmp.lt.s32.totalorder %s2066_s18, %s2066_s18 }
  0x53   : > { %p2069_p12 = pnand %p2067_p9, %p2342_p13  ;;  %p2076_p4 = por %p2075_p1, %p2074_p2 }
  0x55   : > { %p2070_p0 = pneg %p2069_p12 }
  0x57   : > { %p2077_p8 = pnand %p2076_p4, %p2070_p0 }
  0x59   : > { %2080 = shalt.err (!%p2077_p8)
}
  0x5a   : > { %s2222_s14 = smov 64   ;;  %s2223_s12 = smov 4  }
  0x5b   : > { %1835 = dma.hbm_to_vmem [thread:$0]  (!%p2328_p11), %s2684_s2, 1024, %s256_s21, [#allocation6], %s2222_s14, %s2222_s14, %s2223_s12  }
  0x5c   : > { %s2224_s19 = smov [#allocation10]   ;;  %s2081_s25 = scalar_lea.hbm %s2688_s6, 2048 }
  0x5d   : > { %s287_s20 = sshll.u32 %s2224_s19, 4  ;;  %p2082_p4 = scmp.ne.s32.totalorder %s2688_s6, %s2081_s25  ;;  %s288_s20 = int_to_ptr.vmem [resolvable:$true] %s287_s20 }
  0x5e   : > { %p2088_p10 = scmp.lt.u32.totalorder %s2081_s25, %s2688_s6 }
  0x5f   : > { %p2084_p8 = pnand %p2082_p4, %p2342_p13 }
  0x61   : > { %p2085_p6 = pneg %p2084_p8 }
  0x63   : > { %p2090_p3 = pnand %p2088_p10, %p2085_p6 }
  0x65   : > { %2093 = shalt.err (!%p2090_p3)
}
  0x66   : > { %s2094_s21 = scalar_lea.vmem %s288_s20, 2048  ;;  %p2102_p12 = scmp.lt.s32.totalorder %s288_s20, %s288_s20 }
  0x67   : > { %p2095_p5 = scmp.ne.s32.totalorder %s288_s20, %s2094_s21  ;;  %p2103_p0 = scmp.lt.s32.totalorder %s2094_s21, %s2094_s21 }
  0x69   : > { %p2097_p7 = pnand %p2095_p5, %p2342_p13  ;;  %p2104_p2 = por %p2103_p0, %p2102_p12 }
  0x6b   : > { %p2098_p9 = pneg %p2097_p7 }
  0x6d   : > { %p2105_p1 = pnand %p2104_p2, %p2098_p9 }
  0x6f   : > { %2108 = shalt.err (!%p2105_p1)
}
  0x70   : > { %1841 = dma.hbm_to_vmem [thread:$0]  (!%p2328_p11), %s2688_s6, 2048, %s288_s20, [#allocation9], %s2222_s14, %s2222_s14, %s2223_s12  }
  0x71   : > { %s2429_s24 = sadd.s32 1, %s2213_s30   ;;  %s33_s16 = sadd.s32 1, %s2209_s29 }
  0x72   : > { %s30_s19 = ssub.s32 %s2213_s30, %s2429_s24  ;;  %p40_p13 = scmp.ne.s32.totalorder %s2209_s29, %s2205_s28 }
  0x73   : > { %p31_p4 = scmp.eq.s32.totalorder %s30_s19, 0  ;;  %p41_p8 = scmp.eq.s32.totalorder %s2213_s30, 0 }
  0x74   : > { %p2703_p6 = scmp.eq.s32.totalorder %s2298_s9, 1  ;;  %p1854_p3 = scmp.lt.s32.totalorder %s2213_s30, 2 }
  0x75   : > { %s2445_s23 = scalar_select %p31_p4, %s2209_s29, %s33_s16  }
  0x76   : > { %p2439_p10 = por %p2703_p6, %p40_p13  ;;  %p42_p5 = por %p41_p8, %p40_p13 }
  0x77   : > { %s304_s25 = sand.u32 1, %s2209_s29   ;;  %s1617_s20 = sshll.u32 %s2213_s30, 7 }
  0x78   : > { %s1529_s26 = sshll.u32 %s304_s25, 3  ;;  %s2452_s18 = scalar_lea.hbm %s2682_s0, %s1617_s20 }
  0x79   : > { %s308_s21 = scalar_lea.vmem [#allocation2], %s1529_s26  ;;  %p2456_p11 = pnand %p1854_p3, %p42_p5 }
  0x7a   : > { %s315_s1 = sshll.u32 %s308_s21, 4  ;;  %s2460_s16 = scalar_lea.sflag [#allocation3], %s304_s25  ;;  %s2454_s1 = int_to_ptr.vmem [resolvable:$true] %s315_s1 }
  0x7b   : > { %s2109_s19 = scalar_lea.hbm %s2452_s18, 128  ;;  %p2111_p9 = pneg %p2456_p11 }
  0x7c   : > { %p2110_p7 = scmp.ne.s32.totalorder %s2452_s18, %s2109_s19  ;;  %s2114_s10 = scalar_lea.hbm %s2682_s0, 256 }
  0x7d   : > { %p2115_p2 = scmp.lt.u32.totalorder %s2452_s18, %s2682_s0  ;;  %p2116_p1 = scmp.lt.u32.totalorder %s2114_s10, %s2109_s19 }
  0x7e   : > { %p2112_p12 = pnand %p2111_p9, %p2110_p7  ;;  %p2118_p4 = scmp.lt.u32.totalorder %s2109_s19, %s2452_s18 }
  0x7f   : > { %p2117_p13 = por %p2116_p1, %p2115_p2 }
  0x80   : > { %p2113_p0 = pneg %p2112_p12 }
  0x81   : > { %p2119_p8 = por %p2118_p4, %p2117_p13 }
  0x83   : > { %p2120_p6 = pnand %p2119_p8, %p2113_p0 }
  0x85   : > { %2123 = shalt.err (!%p2120_p6)
}
  0x86   : > { %s2124_s25 = scalar_lea.vmem %s2454_s1, 128  ;;  %s2225_s26 = smov [#allocation2]  }
  0x87   : > { %p2125_p3 = scmp.ne.s32.totalorder %s2454_s1, %s2124_s25  ;;  %s2129_s20 = sshll.u32 %s2225_s26, 4  ;;  %s2130_s20 = int_to_ptr.vmem [resolvable:$false] %s2129_s20 }
  0x88   : > { %s2131_s15 = scalar_lea.vmem %s2130_s20, 256  ;;  %p2132_p12 = scmp.lt.s32.totalorder %s2454_s1, %s2130_s20 }
  0x89   : > { %p2127_p5 = pnand %p2125_p3, %p2111_p9  ;;  %p2133_p2 = scmp.lt.s32.totalorder %s2131_s15, %s2124_s25 }
  0x8b   : > { %p2128_p7 = pneg %p2127_p5  ;;  %p2134_p1 = por %p2133_p2, %p2132_p12 }
  0x8d   : > { %p2135_p13 = pnand %p2134_p1, %p2128_p7 }
  0x8f   : > { %2138 = shalt.err (!%p2135_p13)
}
  0x90   : > { %1845 = dma.hbm_to_vmem [thread:$0]  (!%p2456_p11), %s2452_s18, 128, %s2454_s1, %s2460_s16, %s2222_s14, %s2222_s14, %s2223_s12  }
  0x91   : > { %p2706_p9 = scmp.ne.s32.totalorder %s2699_s13, 0 }
  0x92   : > { %s2494_s19 = sand.u32 (!%p2706_p9), 1, %s2205_s28   ;;  %p2707_p0 = scmp.ne.s32.totalorder (!%p2706_p9), %s2696_s11, 0 }
  0x93   : > { %327 = sbr.rel (%p2706_p9) target bundleno = 2466 (0x9a2), region = 52  ;;  %s1533_s10 = sshll.u32 (!%p2706_p9), %s2494_s19, 3 }
  0x94   : > { %s330_s21 = scalar_lea.sflag (!%p2706_p9), [#allocation3], %s2494_s19  ;;  %s2498_s25 = scalar_lea.vmem (!%p2706_p9), [#allocation2], %s1533_s10 }
  0x9a   : > { %2184 = dma.done.wait (%p2707_p0), %s330_s21, 128  }
  0x9b   : > { %2186 = vsyncadd (%p2707_p0), %s330_s21, 4294967168  ;;  %p2708_p11 = scmp.eq.s32.totalorder %s2298_s9, 0 }
  0x9d   : > { %2188 = dma.done.wait (%p2708_p11), [#allocation6], 4096   ;;  %p2709_p4 = pmov %p2708_p11 }
  0x9f   : > { %2190 = vsyncadd (%p2709_p4), [#allocation6], 4294963200  ;;  %p2710_p8 = pmov %p2709_p4 }
  0xa0   : > { %p2711_p6 = pmov %p2709_p4 }
  0xa1   : > { %2192 = dma.done.wait (%p2710_p8), [#allocation9], 4096  }
  0xa2   : > { %2194 = vsyncadd (%p2711_p6), [#allocation9], 4294963200  ;;  %v2226_v0 = vmov 0   ;;  %v2227_v1 = vmov 0.0   ;;  %v1907_v2 = vld [vmem:[#allocation5 + $0x4] ss:$12 sps:$4 sm:$0xff]   ;;  %v389_v38 = vlaneseq }
  0xa3   : > { %590 = vmatprep.mubr.bf16.mxu0 %v2226_v0  ;;  %1677 = vmatprep.subr.bf16.mxu1 %v2227_v1  ;;  %v1909_v3 = vld [vmem:[#allocation5] ss:$12 sps:$4 sm:$0xff]   ;;  %v1910_v4 = vld [vmem:[#allocation5 + $0x1c] ss:$12 sps:$4 sm:$0xff]   ;;  %v1912_v5 = vld [vmem:[#allocation5 + $0x18] ss:$12 sps:$4 sm:$0xff]  }
  0xa4   : > { %558 = vmatprep.subr.bf16.mxu0 %v1907_v2  ;;  %v1913_v6 = vld [vmem:[#allocation5 + $0x34] ss:$12 sps:$4 sm:$0xff]   ;;  %v1915_v7 = vld [vmem:[#allocation5 + $0x30] ss:$12 sps:$4 sm:$0xff]   ;;  %v1916_v8 = vld [vmem:[#allocation5 + $0x4c] ss:$12 sps:$4 sm:$0xff]  }
  0xa5   : > { %559 = vmatpush1.bf16.msra.mxu0 %v1909_v3  ;;  %v1918_v9 = vld [vmem:[#allocation5 + $0x48] ss:$12 sps:$4 sm:$0xff]   ;;  %v1919_v11 = vld [vmem:[#allocation5 + $0x64] ss:$12 sps:$4 sm:$0xff]   ;;  %v1933_v12 = vld [vmem:[#allocation5 + $0x20] ss:$12 sps:$4 sm:$0xff]  }
  0xa6   : > { %560 = vmatprep.subr.bf16.mxu0 %v1910_v4  ;;  %v1932_v10 = vld [vmem:[#allocation5 + $0x8] ss:$12 sps:$4 sm:$0xff]   ;;  %v1921_v13 = vld [vmem:[#allocation5 + $0x60] ss:$12 sps:$4 sm:$0xff]   ;;  %v1924_v15 = vld [vmem:[#allocation5 + $0x78] ss:$12 sps:$4 sm:$0xff]  }
  0xa7   : > { %1678 = vmatpush3.bf16.msra.mxu1 %v1932_v10  ;;  %v1922_v14 = vld [vmem:[#allocation5 + $0x7c] ss:$12 sps:$4 sm:$0xff]   ;;  %v1934_v16 = vld [vmem:[#allocation5 + $0x38] ss:$12 sps:$4 sm:$0xff]   ;;  %v1925_v17 = vld [vmem:[#allocation5 + $0x94] ss:$12 sps:$4 sm:$0xff]  }
  0xa8   : > { %1679 = vmatprep.subr.bf16.mxu1 %v2227_v1  ;;  %v1935_v18 = vld [vmem:[#allocation5 + $0x50] ss:$12 sps:$4 sm:$0xff]   ;;  %v1928_v20 = vld [vmem:[#allocation5 + $0xac] ss:$12 sps:$4 sm:$0xff]   ;;  %v1936_v21 = vld [vmem:[#allocation5 + $0x68] ss:$12 sps:$4 sm:$0xff]  }
  0xa9   : > { %561 = vmatpush1.bf16.msra.mxu0 %v1912_v5  ;;  %v1927_v19 = vld [vmem:[#allocation5 + $0x90] ss:$12 sps:$4 sm:$0xff]   ;;  %v1930_v22 = vld [vmem:[#allocation5 + $0xa8] ss:$12 sps:$4 sm:$0xff]   ;;  %v1937_v24 = vld [vmem:[#allocation5 + $0x80] ss:$12 sps:$4 sm:$0xff]  }
  0xaa   : > { %562 = vmatprep.subr.bf16.mxu0 %v1913_v6  ;;  %v2517_v23 = vld [vmem:[%s2498_s25] sm:$0xff]   ;;  %vm2228_vm0 = vmmov 0   ;;  %v2537_v39 = vand.u32 127, %v389_v38  ;;  %vm691_vm2 = vcmask 130048   ;;  %v1940_v58 = vld [vmem:[#allocation7] sm:$0xff]   ;;  %v1941_v59 = vld [vmem:[#allocation7 + $0x8] sm:$0xff]  }
  0xab   : > { %1680 = vmatpush3.bf16.msra.mxu1 %v1933_v12  ;;  %v1938_v25 = vld [vmem:[#allocation5 + $0x98] ss:$12 sps:$4 sm:$0xff]   ;;  %v1939_v26 = vld [vmem:[#allocation5 + $0xb0] ss:$12 sps:$4 sm:$0xff]   ;;  %1693 = vmatprep.mubr.msk.bf16.mxu1 %vm2228_vm0, %v2227_v1  ;;  %v1945_v63 = vld [vmem:[#allocation7 + $0x28] sm:$0xff]   ;;  %s1538_s15 = sshll.u32 %s2494_s19, 4 }
  0xac   : > { %1681 = vmatprep.subr.bf16.mxu1 %v2227_v1  ;;  %vm686_vm1 = vcmp.lt.s32.totalorder %v2537_v39, 10  ;;  %v1942_v60 = vld [vmem:[#allocation7 + $0x10] sm:$0xff]   ;;  %v1943_v61 = vld [vmem:[#allocation7 + $0x18] sm:$0xff]   ;;  %v1944_v62 = vld [vmem:[#allocation7 + $0x20] sm:$0xff]   ;;  %vm391_vm3 = vcmp.lt.s32.totalorder %v2537_v39, 64  ;;  %s1618_s13 = sshll.u32 %s2298_s9, 8 }
  0xad   : > { %563 = vmatpush1.bf16.msra.mxu0 %v1915_v7  ;;  %v1946_v0 = vld [vmem:[#allocation7 + $0x30] sm:$0xff]   ;;  %v1953_v38 = vld [vmem:[#allocation8 + $0x24] ss:$8 sps:$4 sm:$0xff]   ;;  %s381_s14 = scalar_lea.vmem [#allocation11], %s1538_s15  ;;  %s2636_s17 = scalar_lea.hbm %s2690_s8, %s1618_s13 }
  0xae   : > { %564 = vmatprep.subr.bf16.mxu0 %v1916_v8  ;;  %s1411_s12 = sshll.u32 %s381_s14, 4  ;;  %s1398_s16 = scalar_lea.sflag [#allocation4], %s2494_s19  ;;  %s2638_s12 = int_to_ptr.vmem [resolvable:$true] %s1411_s12 }
  0xaf   : > { %1682 = vmatpush3.bf16.msra.mxu1 %v1934_v16  ;;  %v388_v16 = vunpack.c.h.bf16 %v2517_v23  ;;  %s2139_s26 = scalar_lea.vmem %s2638_s12, 256  ;;  %s2229_s9 = smov [#allocation11]  }
  0xb0   : > { %1683 = vmatprep.subr.bf16.mxu1 %v2227_v1  ;;  %p2140_p3 = scmp.ne.s32.totalorder %s2638_s12, %s2139_s26  ;;  %s2143_s20 = sshll.u32 %s2229_s9, 4  ;;  %s2144_s20 = int_to_ptr.vmem [resolvable:$false] %s2143_s20 }
  0xb1   : > { %565 = vmatpush1.bf16.msra.mxu0 %v1918_v9  ;;  %v1947_v9 = vld [vmem:[#allocation7 + $0x38] sm:$0xff]   ;;  %s2145_s15 = scalar_lea.vmem %s2144_s20, 512  ;;  %p2146_p12 = scmp.lt.s32.totalorder %s2638_s12, %s2144_s20 }
  0xb2   : > { %566 = vmatprep.subr.bf16.mxu0 %v1919_v11  ;;  %p2141_p5 = pnand %p2140_p3, %p2439_p10  ;;  %p2147_p2 = scmp.lt.s32.totalorder %s2145_s15, %s2139_s26 }
  0xb3   : > { %1684 = vmatpush3.bf16.msra.mxu1 %v1935_v18 }
  0xb4   : > { %1685 = vmatprep.subr.bf16.mxu1 %v2227_v1  ;;  %p2142_p7 = pneg %p2141_p5  ;;  %p2148_p1 = por %p2147_p2, %p2146_p12 }
  0xb5   : > { %567 = vmatpush1.bf16.msra.mxu0 %v1921_v13 }
  0xb6   : > { %568 = vmatprep.subr.bf16.mxu0 %v1922_v14  ;;  %p2149_p13 = pnand %p2148_p1, %p2142_p7 }
  0xb7   : > { %1686 = vmatpush3.bf16.msra.mxu1 %v1936_v21 }
  0xb8   : > { %1687 = vmatprep.subr.bf16.mxu1 %v2227_v1 }
  0xb9   : > { %569 = vmatpush1.bf16.msra.mxu0 %v1924_v15  ;;  %v387_v15 = vunpack.c.l.bf16 %v2517_v23 }
  0xba   : > { %570 = vmatprep.subr.bf16.mxu0 %v1925_v17 }
  0xbb   : > { %1688 = vmatpush3.bf16.msra.mxu1 %v1937_v24  ;;  %v1948_v24 = vld [vmem:[#allocation8] ss:$8 sps:$4 sm:$0xff]  }
  0xbc   : > { %1689 = vmatprep.subr.bf16.mxu1 %v2227_v1 }
  0xbd   : > { %571 = vmatpush1.bf16.msra.mxu0 %v1927_v19 }
  0xbe   : > { %572 = vmatprep.subr.bf16.mxu0 %v1928_v20 }
  0xbf   : > { %1690 = vmatpush3.bf16.msra.mxu1 %v1938_v25  ;;  %v1949_v25 = vld [vmem:[#allocation8 + $0x4] ss:$8 sps:$4 sm:$0xff]  }
  0xc0   : > { %1691 = vmatprep.subr.bf16.mxu1 %v2227_v1 }
  0xc1   : > { %573 = vmatpush1.bf16.msra.mxu0 %v1930_v22 }
  0xc2   : > { %1709 = vmatprep.subr.bf16.mxu0 %v2227_v1 }
  0xc3   : > { %1692 = vmatpush3.bf16.msra.mxu1 %v1939_v26  ;;  %v1950_v26 = vld [vmem:[#allocation8 + $0x10] ss:$8 sps:$4 sm:$0xff]  }
  0xc4   : > { %591 = vmatmul.mubr.bf16.vlgmr.msra.gmra.mrb[0].mxu0 %v2517_v23  ;;  %1697 = vmatprep.subr.bf16.mxu1 %v2227_v1 }
  0xc5   : > { %1725 = vmatprep.mubr.msk.bf16.mxu0 %vm2228_vm0, %v2227_v1  ;;  %1710 = vmatpush3.bf16.msra.mxu0 %v1940_v58 }
  0xc6   : > { %1694 = vmatmul.mubr.bf16.vlgmr.msra.gmra.mrb[0].mxu1 %v2517_v23  ;;  %1711 = vmatprep.subr.bf16.mxu0 %v2227_v1 }
  0xc7   : > { %1699 = vmatprep.mubr.msk.bf16.mxu1 %vm2228_vm0, %v2227_v1 }
  0xc9   : > { %1712 = vmatpush3.bf16.msra.mxu0 %v1941_v59 }
  0xca   : > { %1713 = vmatprep.subr.bf16.mxu0 %v2227_v1 }
  0xcd   : > { %1714 = vmatpush3.bf16.msra.mxu0 %v1942_v60 }
  0xce   : > { %1715 = vmatprep.subr.bf16.mxu0 %v2227_v1 }
  0xd1   : > { %1716 = vmatpush3.bf16.msra.mxu0 %v1943_v61 }
  0xd2   : > { %1717 = vmatprep.subr.bf16.mxu0 %v2227_v1 }
  0xd5   : > { %1718 = vmatpush3.bf16.msra.mxu0 %v1944_v62  ;;  %v1574_v62 = vld [vmem:[%s2685_s3 + $0x1] ss:$0 sm:$0xff] }
  0xd6   : > { %1719 = vmatprep.subr.bf16.mxu0 %v2227_v1 }
  0xd9   : > { %1720 = vmatpush3.bf16.msra.mxu0 %v1945_v63 }
  0xda   : > { %1721 = vmatprep.subr.bf16.mxu0 %v2227_v1 }
  0xdd   : > { %1722 = vmatpush3.bf16.msra.mxu0 %v1946_v0 }
  0xde   : > { %1723 = vmatprep.subr.bf16.mxu0 %v2227_v1 }
  0xe1   : > { %1724 = vmatpush3.bf16.msra.mxu0 %v1947_v9  ;;  %v1969_v9 = vld [vmem:[#allocation10 + $0x10] sm:$0xff]  }
  0xe2   : > { %1749 = vmatprep.subr.bf16.mxu0 %v2227_v1 }
 0x197   : > { %v592_v27 = vpop.f32.mrb[0].mxu0 }
 0x198   : > { %v594_v28 = vpop.f32.mrb[1].mxu0 }
 0x199   : > { %v596_v29 = vpop.f32.mrb[2].mxu0  ;;  %v635_v33 = vpop.f32.mrb[0].mxu1 }
 0x19a   : > { %v642_v30 = vpack.c.bf16 %v596_v29, %v592_v27  ;;  %v598_v31 = vpop.f32.mrb[3].mxu0  ;;  %v1695_v34 = vpop.f32.mrb[1].mxu1  ;;  %v1951_v27 = vld [vmem:[#allocation8 + $0x14] ss:$8 sps:$4 sm:$0xff]  }
 0x19b   : > { %v643_v32 = vpack.c.bf16 %v598_v31, %v594_v28  ;;  %v638_v35 = vpop.f32.mrb[2].mxu1 }
 0x19c   : > { %v644_v36 = vpack.c.bf16 %v638_v35, %v635_v33  ;;  %v1696_v37 = vpop.f32.mrb[3].mxu1 }
 0x19d   : > { %1698 = vmatpush3.bf16.xpose.msra.mxu1 %v643_v32  ;;  %v1952_v37 = vld [vmem:[#allocation8 + $0x20] ss:$8 sps:$4 sm:$0xff]  }
 0x19e   : > { %1703 = vmatprep.subr.bf16.mxu1 %v2227_v1 }
 0x1a4   : > { %1700 = vmatmul.mubr.bf16.vlgmr.msra.gmra.mrb[4].mxu1 %v642_v30 }
 0x1a5   : > { %1705 = vmatprep.mubr.msk.bf16.mxu1 %vm2228_vm0, %v2227_v1  ;;  %1704 = vmatpush3.bf16.msra.mxu1 %v644_v36 }
 0x1a6   : > { %1729 = vmatprep.subr.bf16.mxu1 %v2227_v1 }
 0x277   : > { %v679_v40 = vpop.f32.mrb[4].mxu1 }
 0x278   : > { %v689_v41 = vsel %vm686_vm1, %v679_v40, -1e+30  ;;  %v1701_v42 = vpop.f32.mrb[5].mxu1  ;;  %v1954_v40 = vld [vmem:[#allocation8 + $0x30] ss:$8 sps:$4 sm:$0xff]  }
 0x279   : > { %v682_v43 = vpop.f32.mrb[6].mxu1  ;;  %v692_v44 = vsel %vm691_vm2, %v689_v41, -inf  ;;  %v1956_v42 = vld [vmem:[#allocation8 + $0x40] ss:$8 sps:$4 sm:$0xff]  }
 0x27a   : > { %v690_v45 = vsel %vm686_vm1, %v682_v43, -1e+30  ;;  %693 = vmax.xlane.f32.xlu0 %v692_v44  ;;  %v1702_v46 = vpop.f32.mrb[7].mxu1  ;;  %v1957_v43 = vld [vmem:[#allocation8 + $0x44] ss:$8 sps:$4 sm:$0xff]  }
 0x27b   : > { %v695_v47 = vsel %vm691_vm2, %v690_v45, -inf  ;;  %v1958_v44 = vld [vmem:[#allocation8 + $0x50] ss:$8 sps:$4 sm:$0xff]   ;;  %v1960_v46 = vld [vmem:[#allocation8 + $0x60] ss:$8 sps:$4 sm:$0xff]  }
 0x27e   : > { %696 = vmax.xlane.f32.xlu0 %v695_v47  ;;  %v1961_v47 = vld [vmem:[#allocation8 + $0x64] ss:$8 sps:$4 sm:$0xff]  }
 0x307   : > { %v694_v48 = vpop.xlane.xlu0 %693 }
 0x308   : > { %v698_v49 = vsub.f32 %v689_v41, %v694_v48  ;;  %v1955_v41 = vld [vmem:[#allocation8 + $0x34] ss:$8 sps:$4 sm:$0xff]   ;;  %v1962_v48 = vld [vmem:[#allocation8 + $0x70] ss:$8 sps:$4 sm:$0xff]  }
 0x30a   : > { %v700_v50 = vmul.f32 1.442695, %v698_v49  ;;  %v1963_v49 = vld [vmem:[#allocation8 + $0x74] ss:$8 sps:$4 sm:$0xff]  }
 0x30b   : > { %v697_v51 = vpop.xlane.xlu0 %696 }
 0x30c   : > { %1981 = vpow2.f32 %v700_v50  ;;  %v699_v52 = vsub.f32 %v690_v45, %v697_v51  ;;  %v1959_v45 = vld [vmem:[#allocation8 + $0x54] ss:$8 sps:$4 sm:$0xff]  }
 0x30e   : > { %v702_v53 = vmul.f32 1.442695, %v699_v52 }
 0x310   : > { %1983 = vpow2.f32 %v702_v53 }
 0x316   : > { %v1982_v54 = vpop.eup %1981 }
 0x317   : > { %v704_v55 = vsel %vm691_vm2, %v1982_v54, 0.0 }
 0x318   : > { %705 = vadd.xlane.f32.xlu1 %v704_v55 }
 0x31a   : > { %v1984_v56 = vpop.eup %1983 }
 0x31b   : > { %v707_v57 = vsel %vm691_vm2, %v1984_v56, 0.0 }
 0x31c   : > { %708 = vadd.xlane.f32.xlu1 %v707_v57  ;;  %v1573_v57 = vld [vmem:[%s2685_s3] ss:$0 sm:$0xff] }
 0x3a5   : > { %v706_v2 = vpop.xlane.xlu1 %705 }
 0x3a6   : > { %1985 = vrcp.f32 %v706_v2 }
 0x3a9   : > { %v709_v3 = vpop.xlane.xlu1 %708 }
 0x3aa   : > { %1987 = vrcp.f32 %v709_v3  ;;  %v1964_v3 = vld [vmem:[#allocation10 + $0x40] sm:$0xff]  }
 0x3b0   : > { %v1986_v4 = vpop.eup %1985 }
 0x3b1   : > { %v712_v6 = vmul.f32 %v1986_v4, %v1982_v54  ;;  %v1965_v4 = vld [vmem:[#allocation10] sm:$0xff]  }
 0x3b4   : > { %v1988_v5 = vpop.eup %1987 }
 0x3b5   : > { %v713_v7 = vmul.f32 %v1988_v5, %v1984_v56 }
 0x3b7   : > { %v714_v8 = vpack.c.bf16 %v713_v7, %v712_v6  ;;  %v1966_v6 = vld [vmem:[#allocation10 + $0x48] sm:$0xff]  }
 0x3b8   : > { %v1967_v7 = vld [vmem:[#allocation10 + $0x8] sm:$0xff]  }
 0x3b9   : > { %1706 = vmatmul.mubr.msk.bf16.vlgmr.msra.gmra.mrb[8].mxu1 %vm691_vm2, %v714_v8  ;;  %v1968_v8 = vld [vmem:[#allocation10 + $0x50] sm:$0xff]  }
 0x3ba   : > { %1745 = vmatprep.mubr.msk.bf16.mxu1 %vm2228_vm0, %v2227_v1  ;;  %1730 = vmatpush3.bf16.msra.mxu1 %v1948_v24 }
 0x3bb   : > { %1731 = vmatprep.subr.bf16.mxu1 %v2227_v1 }
 0x3be   : > { %1732 = vmatpush3.bf16.msra.mxu1 %v1950_v26 }
 0x3bf   : > { %1733 = vmatprep.subr.bf16.mxu1 %v2227_v1 }
 0x3c2   : > { %1734 = vmatpush3.bf16.msra.mxu1 %v1952_v37 }
 0x3c3   : > { %1735 = vmatprep.subr.bf16.mxu1 %v2227_v1 }
 0x3c6   : > { %1736 = vmatpush3.bf16.msra.mxu1 %v1954_v40 }
 0x3c7   : > { %1737 = vmatprep.subr.bf16.mxu1 %v2227_v1 }
 0x3ca   : > { %1738 = vmatpush3.bf16.msra.mxu1 %v1956_v42 }
 0x3cb   : > { %1739 = vmatprep.subr.bf16.mxu1 %v2227_v1 }
 0x3ce   : > { %1740 = vmatpush3.bf16.msra.mxu1 %v1958_v44 }
 0x3cf   : > { %1741 = vmatprep.subr.bf16.mxu1 %v2227_v1 }
 0x3d2   : > { %1742 = vmatpush3.bf16.msra.mxu1 %v1960_v46 }
 0x3d3   : > { %1743 = vmatprep.subr.bf16.mxu1 %v2227_v1 }
 0x3d6   : > { %1744 = vmatpush3.bf16.msra.mxu1 %v1962_v48 }
 0x3d7   : > { %1769 = vmatprep.subr.bf16.mxu1 %v2227_v1 }
 0x48c   : > { %v752_v10 = vpop.f32.mrb[8].mxu1 }
 0x48d   : > { %v1707_v11 = vpop.f32.mrb[9].mxu1 }
 0x48e   : > { %v755_v12 = vpop.f32.mrb[10].mxu1  ;;  %v1971_v11 = vld [vmem:[#allocation10 + $0x18] sm:$0xff]  }
 0x48f   : > { %v759_v13 = vpack.c.bf16 %v755_v12, %v752_v10  ;;  %v1708_v14 = vpop.f32.mrb[11].mxu1  ;;  %v1970_v10 = vld [vmem:[#allocation10 + $0x58] sm:$0xff]   ;;  %v1972_v12 = vld [vmem:[#allocation10 + $0x60] sm:$0xff]  }
 0x490   : > { %v1974_v14 = vld [vmem:[#allocation10 + $0x68] sm:$0xff]  }
 0x491   : > { %1726 = vmatmul.mubr.bf16.vlgmr.msra.gmra.mrb[4].mxu0 %v759_v13  ;;  %v1973_v13 = vld [vmem:[#allocation10 + $0x20] sm:$0xff]  }
 0x492   : > { %1765 = vmatprep.mubr.msk.bf16.mxu0 %vm2228_vm0, %v2227_v1  ;;  %1750 = vmatpush3.bf16.msra.mxu0 %v1949_v25 }
 0x493   : > { %1751 = vmatprep.subr.bf16.mxu0 %v2227_v1 }
 0x496   : > { %1752 = vmatpush3.bf16.msra.mxu0 %v1951_v27 }
 0x497   : > { %1753 = vmatprep.subr.bf16.mxu0 %v2227_v1 }
 0x49a   : > { %1754 = vmatpush3.bf16.msra.mxu0 %v1953_v38 }
 0x49b   : > { %1755 = vmatprep.subr.bf16.mxu0 %v2227_v1 }
 0x49e   : > { %1756 = vmatpush3.bf16.msra.mxu0 %v1955_v41 }
 0x49f   : > { %1757 = vmatprep.subr.bf16.mxu0 %v2227_v1 }
 0x4a2   : > { %1758 = vmatpush3.bf16.msra.mxu0 %v1957_v43 }
 0x4a3   : > { %1759 = vmatprep.subr.bf16.mxu0 %v2227_v1 }
 0x4a6   : > { %1760 = vmatpush3.bf16.msra.mxu0 %v1959_v45 }
 0x4a7   : > { %1761 = vmatprep.subr.bf16.mxu0 %v2227_v1 }
 0x4aa   : > { %1762 = vmatpush3.bf16.msra.mxu0 %v1961_v47  ;;  %v1609_v47 = vld [vmem:[%s2689_s7] ss:$0 sm:$0xff] }
 0x4ab   : > { %1763 = vmatprep.subr.bf16.mxu0 %v2227_v1 }
 0x4ae   : > { %1764 = vmatpush3.bf16.msra.mxu0 %v1963_v49 }
 0x4af   : > { %1789 = vmatprep.subr.bf16.mxu0 %v2227_v1 }
 0x564   : > { %v858_v17 = vpop.f32.mrb[4].mxu0 }
 0x565   : > { %v865_v18 = vadd.f32 %v858_v17, %v387_v15  ;;  %v1727_v19 = vpop.f32.mrb[5].mxu0  ;;  %v1975_v15 = vld [vmem:[#allocation10 + $0x28] sm:$0xff]   ;;  %v1977_v17 = vld [vmem:[#allocation10 + $0x30] sm:$0xff]  }
 0x566   : > { %v861_v20 = vpop.f32.mrb[6].mxu0  ;;  %v1979_v19 = vld [vmem:[#allocation10 + $0x38] sm:$0xff]  }
 0x567   : > { %v866_v21 = vadd.f32 %v861_v20, %v388_v16  ;;  %v1728_v22 = vpop.f32.mrb[7].mxu0  ;;  %869 = vadd.xlane.f32.xlu0 %v865_v18  ;;  %v1976_v16 = vld [vmem:[#allocation10 + $0x70] sm:$0xff]  }
 0x568   : > { %v1575_v20 = vld [vmem:[%s2687_s5] ss:$0 sm:$0xff] }
 0x569   : > { %871 = vadd.xlane.f32.xlu1 %v866_v21 }
 0x5f4   : > { %v870_v23 = vpop.xlane.xlu0 %869 }
 0x5f5   : > { %v873_v28 = vmul.f32 0.015625, %v870_v23 }
 0x5f6   : > { %v872_v29 = vpop.xlane.xlu1 %871 }
 0x5f7   : > { %v875_v30 = vsub.f32 %v865_v18, %v873_v28  ;;  %v874_v31 = vmul.f32 0.015625, %v872_v29  ;;  %v1978_v18 = vld [vmem:[#allocation10 + $0x78] sm:$0xff]  }
 0x5f9   : > { %v876_v32 = vsub.f32 %v866_v21, %v874_v31  ;;  %v879_v33 = vsel %vm391_vm3, %v875_v30, 0.0  ;;  %v1584_v21 = vld [vmem:[%s2687_s5 + $0x1] ss:$0 sm:$0xff] }
 0x5fa   : > { %v881_v34 = vmul.f32 %v879_v33, %v879_v33 }
 0x5fb   : > { %v880_v35 = vsel %vm391_vm3, %v876_v32, 0.0 }
 0x5fc   : > { %883 = vadd.xlane.f32.xlu0 %v881_v34  ;;  %v882_v36 = vmul.f32 %v880_v35, %v880_v35 }
 0x5fe   : > { %885 = vadd.xlane.f32.xlu1 %v882_v36 }
 0x689   : > { %v884_v50 = vpop.xlane.xlu0 %883 }
 0x68a   : > { %v887_v51 = vmul.f32 0.015625, %v884_v50 }
 0x68b   : > { %v886_v52 = vpop.xlane.xlu1 %885 }
 0x68c   : > { %v889_v53 = vadd.f32 1e-05, %v887_v51  ;;  %v888_v54 = vmul.f32 0.015625, %v886_v52 }
 0x68e   : > { %1989 = vrsqrt.f32 %v889_v53  ;;  %v890_v55 = vadd.f32 1e-05, %v888_v54 }
 0x690   : > { %1991 = vrsqrt.f32 %v890_v55 }
 0x698   : > { %v1990_v56 = vpop.eup %1989 }
 0x699   : > { %v893_v58 = vmul.f32 %v1990_v56, %v875_v30 }
 0x69a   : > { %v1992_v59 = vpop.eup %1991 }
 0x69b   : > { %v894_v60 = vmul.f32 %v1992_v59, %v876_v32  ;;  %v899_v61 = vmul.f32 %v1573_v57, %v893_v58 }
 0x69d   : > { %v900_v63 = vmul.f32 %v1573_v57, %v894_v60  ;;  %v2586_v0 = vadd.f32 %v1574_v62, %v899_v61 }
 0x69f   : > { %v2588_v2 = vadd.f32 %v1574_v62, %v900_v63 }
 0x6a1   : > { %v907_v5 = vpack.c.bf16 %v2588_v2, %v2586_v0 }
 0x6a3   : > { %1746 = vmatmul.mubr.bf16.vlgmr.msra.gmra.mrb[12].mxu1 %v907_v5  ;;  %1766 = vmatmul.mubr.bf16.vlgmr.msra.gmra.mrb[8].mxu0 %v907_v5 }
 0x6a4   : > { %1770 = vmatpush3.bf16.msra.mxu1 %v1964_v3  ;;  %1790 = vmatpush3.bf16.msra.mxu0 %v1965_v4 }
 0x6a5   : > { %1771 = vmatprep.subr.bf16.mxu1 %v2227_v1  ;;  %1791 = vmatprep.subr.bf16.mxu0 %v2227_v1 }
 0x6a6   : > { %1785 = vmatprep.mubr.msk.bf16.mxu1 %vm2228_vm0, %v2227_v1  ;;  %1805 = vmatprep.mubr.msk.bf16.mxu0 %vm2228_vm0, %v2227_v1 }
 0x6a8   : > { %1772 = vmatpush3.bf16.msra.mxu1 %v1966_v6  ;;  %1792 = vmatpush3.bf16.msra.mxu0 %v1967_v7 }
 0x6a9   : > { %1773 = vmatprep.subr.bf16.mxu1 %v2227_v1  ;;  %1793 = vmatprep.subr.bf16.mxu0 %v2227_v1 }
 0x6ac   : > { %1774 = vmatpush3.bf16.msra.mxu1 %v1968_v8  ;;  %1794 = vmatpush3.bf16.msra.mxu0 %v1969_v9  ;;  %v1610_v9 = vld [vmem:[%s2689_s7 + $0x1] ss:$0 sm:$0xff] }
 0x6ad   : > { %1775 = vmatprep.subr.bf16.mxu1 %v2227_v1  ;;  %1795 = vmatprep.subr.bf16.mxu0 %v2227_v1 }
 0x6b0   : > { %1776 = vmatpush3.bf16.msra.mxu1 %v1970_v10  ;;  %1796 = vmatpush3.bf16.msra.mxu0 %v1971_v11  ;;  %v1611_v11 = vld [vmem:[%s2689_s7 + $0x2] ss:$0 sm:$0xff] }
 0x6b1   : > { %1777 = vmatprep.subr.bf16.mxu1 %v2227_v1  ;;  %1797 = vmatprep.subr.bf16.mxu0 %v2227_v1 }
 0x6b4   : > { %1778 = vmatpush3.bf16.msra.mxu1 %v1972_v12  ;;  %1798 = vmatpush3.bf16.msra.mxu0 %v1973_v13 }
 0x6b5   : > { %1779 = vmatprep.subr.bf16.mxu1 %v2227_v1  ;;  %1799 = vmatprep.subr.bf16.mxu0 %v2227_v1 }
 0x6b8   : > { %1780 = vmatpush3.bf16.msra.mxu1 %v1974_v14  ;;  %1800 = vmatpush3.bf16.msra.mxu0 %v1975_v15 }
 0x6b9   : > { %1781 = vmatprep.subr.bf16.mxu1 %v2227_v1  ;;  %1801 = vmatprep.subr.bf16.mxu0 %v2227_v1 }
 0x6bc   : > { %1782 = vmatpush3.bf16.msra.mxu1 %v1976_v16  ;;  %1802 = vmatpush3.bf16.msra.mxu0 %v1977_v17 }
 0x6bd   : > { %1783 = vmatprep.subr.bf16.mxu1 %v2227_v1  ;;  %1803 = vmatprep.subr.bf16.mxu0 %v2227_v1 }
 0x6c0   : > { %1784 = vmatpush3.bf16.msra.mxu1 %v1978_v18  ;;  %1804 = vmatpush3.bf16.msra.mxu0 %v1979_v19 }
 0x776   : > { %v1013_v22 = vpop.f32.mrb[12].mxu1  ;;  %v1144_v24 = vpop.f32.mrb[8].mxu0 }
 0x777   : > { %v1014_v25 = vadd.f32 %v1575_v20, %v1013_v22  ;;  %v1145_v26 = vadd.f32 %v1584_v21, %v1144_v24  ;;  %v1747_v27 = vpop.f32.mrb[13].mxu1  ;;  %v1767_v23 = vpop.f32.mrb[9].mxu0 }
 0x778   : > { %v1016_v28 = vpop.f32.mrb[14].mxu1  ;;  %v1147_v1 = vpop.f32.mrb[10].mxu0 }
 0x779   : > { %v1017_v29 = vadd.f32 %v1575_v20, %v1016_v28  ;;  %v1148_v30 = vadd.f32 %v1584_v21, %v1147_v1  ;;  %v1748_v31 = vpop.f32.mrb[15].mxu1  ;;  %v1768_v32 = vpop.f32.mrb[11].mxu0  ;;  %v1020_v33 = vmax.f32 %v1014_v25, 0.0  ;;  %v1151_v34 = vmax.f32 %v1145_v26, 0.0 }
 0x77b   : > { %v1021_v35 = vmax.f32 %v1017_v29, 0.0  ;;  %v1152_v36 = vmax.f32 %v1148_v30, 0.0 }
 0x77d   : > { %v1022_v37 = vpack.c.bf16 %v1021_v35, %v1020_v33  ;;  %v1153_v38 = vpack.c.bf16 %v1152_v36, %v1151_v34 }
 0x77f   : > { %1786 = vmatmul.mubr.bf16.vlgmr.msra.gmra.mrb[16].mxu1 %v1153_v38  ;;  %1806 = vmatmul.mubr.bf16.vlgmr.msra.gmra.mrb[12].mxu0 %v1022_v37 }
 0x852   : > { %v1252_v40 = vpop.f32.mrb[16].mxu1  ;;  %v1341_v41 = vpop.f32.mrb[12].mxu0 }
 0x853   : > { %v1342_v42 = vadd.f32 %v1341_v41, %v1252_v40  ;;  %v1787_v43 = vpop.f32.mrb[17].mxu1  ;;  %v1807_v44 = vpop.f32.mrb[13].mxu0 }
 0x854   : > { %v1255_v45 = vpop.f32.mrb[18].mxu1  ;;  %v1344_v46 = vpop.f32.mrb[14].mxu0 }
 0x855   : > { %v1348_v48 = vadd.f32 %v1342_v42, %v2586_v0  ;;  %v1345_v49 = vadd.f32 %v1344_v46, %v1255_v45  ;;  %v1788_v50 = vpop.f32.mrb[19].mxu1  ;;  %v1808_v51 = vpop.f32.mrb[15].mxu0 }
 0x857   : > { %v1349_v52 = vadd.f32 %v1345_v49, %v2588_v2  ;;  %v1355_v53 = vadd.f32 %v1609_v47, %v1348_v48 }
 0x859   : > { %1359 = vadd.xlane.f32.xlu0 %v1355_v53  ;;  %v1356_v54 = vadd.f32 %v1609_v47, %v1349_v52 }
 0x85b   : > { %1361 = vadd.xlane.f32.xlu1 %v1356_v54 }
 0x8e6   : > { %v1360_v55 = vpop.xlane.xlu0 %1359 }
 0x8e7   : > { %v1363_v56 = vmul.f32 0.015625, %v1360_v55 }
 0x8e8   : > { %v1362_v57 = vpop.xlane.xlu1 %1361 }
 0x8e9   : > { %v1365_v58 = vsub.f32 %v1355_v53, %v1363_v56  ;;  %v1364_v59 = vmul.f32 0.015625, %v1362_v57 }
 0x8eb   : > { %v1366_v60 = vsub.f32 %v1356_v54, %v1364_v59  ;;  %v1367_v61 = vsel %vm391_vm3, %v1365_v58, 0.0 }
 0x8ec   : > { %v1369_v62 = vmul.f32 %v1367_v61, %v1367_v61 }
 0x8ed   : > { %v1368_v63 = vsel %vm391_vm3, %v1366_v60, 0.0 }
 0x8ee   : > { %1371 = vadd.xlane.f32.xlu0 %v1369_v62  ;;  %v1370_v0 = vmul.f32 %v1368_v63, %v1368_v63 }
 0x8f0   : > { %1373 = vadd.xlane.f32.xlu1 %v1370_v0 }
 0x97b   : > { %v1372_v2 = vpop.xlane.xlu0 %1371 }
 0x97c   : > { %v1375_v3 = vmul.f32 0.015625, %v1372_v2 }
 0x97d   : > { %v1374_v4 = vpop.xlane.xlu1 %1373 }
 0x97e   : > { %v1377_v5 = vadd.f32 1e-05, %v1375_v3  ;;  %v1376_v6 = vmul.f32 0.015625, %v1374_v4 }
 0x980   : > { %1993 = vrsqrt.f32 %v1377_v5  ;;  %v1378_v7 = vadd.f32 1e-05, %v1376_v6 }
 0x982   : > { %1995 = vrsqrt.f32 %v1378_v7 }
 0x98a   : > { %v1994_v8 = vpop.eup %1993 }
 0x98b   : > { %v1381_v39 = vmul.f32 %v1994_v8, %v1365_v58 }
 0x98c   : > { %v1996_v10 = vpop.eup %1995 }
 0x98d   : > { %v1387_v12 = vmul.f32 %v1610_v9, %v1381_v39  ;;  %v1382_v13 = vmul.f32 %v1996_v10, %v1366_v60 }
 0x98f   : > { %v1393_v14 = vadd.f32 %v1611_v11, %v1387_v12  ;;  %v1388_v15 = vmul.f32 %v1610_v9, %v1382_v13 }
 0x991   : > { %v1394_v16 = vadd.f32 %v1611_v11, %v1388_v15  ;;  %1395 = vst [vmem:[%s381_s14] sm:$0xff] %v1393_v14 }
 0x993   : > { %1396 = vst [vmem:[%s381_s14 + $0x8] sm:$0xff] %v1394_v16 }
 0x994   : > { %2152 = shalt.err (!%p2149_p13)
}
 0x995   : > { %s2153_s10 = scalar_lea.hbm %s2636_s17, 256  ;;  %s2157_s11 = scalar_lea.hbm %s2690_s8, 512 }
 0x996   : > { %p2154_p9 = scmp.ne.s32.totalorder %s2636_s17, %s2153_s10  ;;  %p2158_p4 = scmp.lt.u32.totalorder %s2636_s17, %s2690_s8 }
 0x997   : > { %p2159_p8 = scmp.lt.u32.totalorder %s2157_s11, %s2153_s10  ;;  %p2161_p3 = scmp.lt.u32.totalorder %s2153_s10, %s2636_s17 }
 0x998   : > { %p2155_p0 = pnand %p2154_p9, %p2439_p10 }
 0x999   : > { %p2160_p6 = por %p2159_p8, %p2158_p4 }
 0x99a   : > { %p2156_p11 = pneg %p2155_p0 }
 0x99b   : > { %p2162_p5 = por %p2161_p3, %p2160_p6 }
 0x99d   : > { %p2163_p7 = pnand %p2162_p5, %p2156_p11 }
 0x99f   : > { %2166 = shalt.err (!%p2163_p7)
}
 0x9a0   : > { %s2230_s18 = smov 128   ;;  %s2231_s1 = smov 8  }
 0x9a1   : > { %1827 = dma.vmem_to_hbm [thread:$0]  (%p2439_p10), %s2638_s12, 256, %s2636_s17, %s1398_s16, %s2230_s18, %s2230_s18, %s2231_s1  }
 0x9a2 PF: > { %s2712_s26 = sld [smem:[#allocation16_spill]]  ;;  %s1426_s9 = sand.u32 1, %s2201_s27  }
 0x9a3   : > { %p2714_p2 = scmp.ge.s32.totalorder %s2213_s30, 2  ;;  %s1427_s20 = scalar_lea.sflag [#allocation4], %s1426_s9 }
 0x9a8   : > { %p2713_p12 = scmp.ne.s32.totalorder %s2712_s26, 0 }
 0x9aa   : > { %p1847_p1 = pnand %p2714_p2, %p2713_p12 }
 0x9ac   : > { %2196 = dma.done.wait (!%p1847_p1), %s1427_s20, 256  }
 0x9ad   : > { %2198 = vsyncadd (!%p1847_p1), %s1427_s20, 4294967040  ;;  %p23_p13 = scmp.ge.s32.totalorder %s2429_s24, 4   ;;  %s2715_s27 = smov %s2205_s28 }
 0x9ae   : > { %s2716_s28 = smov %s2209_s29  ;;  %s2717_s29 = smov %s2445_s23 }
 0x9af   : > { %s2718_s30 = smov %s2429_s24  ;;  %25 = sbr.rel (!%p23_p13) target bundleno = 9 (0x9), region = 113 }
 0x9b6   :  { %1432 = vsyncpa [#allocation3], 1 }
 0x9b7   :  { %1434 = vsyncpa [#allocation3 + $0x1], 1 }
 0x9b8   :  { %1435 = vsyncpa [#allocation6], 1 }
 0x9b9   :  { %1436 = vsyncpa [#allocation9], 1 }
 0x9ba   :  { %1437 = vsyncpa [#allocation4], 1 }
 0x9bb   :  { %1439 = vsyncpa [#allocation4 + $0x1], 1 }

</bundles_post_ra>
